<compile_context>
chip_gen: v7x
topology: tpu7x:2x2x1
jax: 0.10.0
libtpu: 0.0.40
codegen_flags: <defaults>
</compile_context>

<pallas_src>
import math

import jax
import jax.numpy as jnp
from jax.experimental import pallas as pl
from jax.experimental.pallas import tpu as pltpu

_BN_EPS = 1e-5  # torch.nn.BatchNorm2d default


def _resnext_block_kernel(x_ref, w1_ref, b1_ref, wdw_ref, b2_ref, w3_ref,
                          b3_ref, o_ref, pad_ref):
    """Fused pointwise/depthwise/pointwise conv block on one NHWC image.

    x_ref:   (H, W, Cin)
    w1_ref:  (Cin, Cmid)     1x1 conv #1 weight, BN1 folded in
    b1_ref:  (1, Cmid)       folded bias
    wdw_ref: (K, K, Cmid)    depthwise weight, BN2 scale folded in
    b2_ref:  (1, Cmid)       folded bias
    w3_ref:  (Cmid, Cout)    1x1 conv #2 weight, BN3 folded in
    b3_ref:  (1, Cout)       folded bias
    o_ref:   (H, W, Cout)
    pad_ref: (H+2P, W+2P, Cmid) f32 VMEM halo scratch for 'same' padding
    """
    H, W, cin = x_ref.shape
    K = wdw_ref.shape[0]
    cmid = w1_ref.shape[1]
    cout = w3_ref.shape[1]
    P = K // 2

    # ---- stage 1: 1x1 conv (+ folded BN1) + ReLU  (MXU matmul) -----------
    x = x_ref[...].astype(jnp.float32).reshape(H * W, cin)
    y1 = jnp.dot(x, w1_ref[...], preferred_element_type=jnp.float32)
    y1 = jnp.maximum(y1 + b1_ref[...], 0.0)                       # (H*W, Cmid)

    # ---- stage 2: KxK depthwise conv (+ folded BN2) + ReLU ----------------
    # 'same' zero padding via a VMEM halo scratch; the K*K taps are static
    # shifted slices accumulated on the VPU.
    pad_ref[...] = jnp.zeros_like(pad_ref)
    pad_ref[pl.ds(P, H), pl.ds(P, W), :] = y1.reshape(H, W, cmid)
    acc = jnp.zeros((H, W, cmid), jnp.float32)
    for dy in range(K):
        for dx in range(K):
            tap = pad_ref[pl.ds(dy, H), pl.ds(dx, W), :]
            acc = acc + tap * wdw_ref[dy:dy + 1, dx:dx + 1, :]
    y2 = jnp.maximum(acc + b2_ref[...], 0.0)                      # (H, W, Cmid)

    # ---- stage 3: 1x1 conv (+ folded BN3) + ReLU  (MXU matmul) -----------
    y3 = jnp.dot(y2.reshape(H * W, cmid), w3_ref[...],
                 preferred_element_type=jnp.float32)
    y3 = jnp.maximum(y3 + b3_ref[...], 0.0)
    o_ref[...] = y3.reshape(H, W, cout).astype(o_ref.dtype)


def _fold_bn(gamma, beta, mean, var, eps):
    """Return (scale, shift) such that BN(y) == y * scale + shift (eval mode)."""
    s = gamma / jnp.sqrt(var + eps)
    t = beta - mean * s
    return s, t


def resnext_block(x, p, *, eps=_BN_EPS):
    """Forward pass of ResNeXtBlock (eval-mode BatchNorm, ReLU activations).

    x: (B, Cin, H, W)  NCHW, like the PyTorch module
    p: dict of parameters in torch layouts:
       pw1_w (Cmid,Cin,1,1), pw1_b (Cmid,), bn1_{gamma,beta,mean,var} (Cmid,)
       dw_w  (Cmid,1,K,K),   dw_b  (Cmid,), bn2_{gamma,beta,mean,var} (Cmid,)
       pw2_w (Cout,Cmid,1,1),pw2_b (Cout,), bn3_{gamma,beta,mean,var} (Cout,)
    returns: (B, Cout, H, W)
    """
    B, Cin, H, W = x.shape
    Cmid = p["pw1_w"].shape[0]
    Cout = p["pw2_w"].shape[0]
    K = p["dw_w"].shape[-1]
    assert K % 2 == 1, "odd kernel_size expected for 'same' padding"
    P = K // 2

    # --- fold eval-mode BatchNorm into the adjacent convs (wrapper-side) ---
    s1, t1 = _fold_bn(p["bn1_gamma"], p["bn1_beta"], p["bn1_mean"], p["bn1_var"], eps)
    s2, t2 = _fold_bn(p["bn2_gamma"], p["bn2_beta"], p["bn2_mean"], p["bn2_var"], eps)
    s3, t3 = _fold_bn(p["bn3_gamma"], p["bn3_beta"], p["bn3_mean"], p["bn3_var"], eps)

    f32 = jnp.float32
    w1 = (jnp.transpose(p["pw1_w"][:, :, 0, 0], (1, 0)) * s1[None, :]).astype(f32)   # (Cin, Cmid)
    b1 = (p["pw1_b"] * s1 + t1).reshape(1, Cmid).astype(f32)
    wdw = (jnp.transpose(p["dw_w"][:, 0, :, :], (1, 2, 0)) * s2[None, None, :]).astype(f32)  # (K,K,Cmid)
    b2 = (p["dw_b"] * s2 + t2).reshape(1, Cmid).astype(f32)
    w3 = (jnp.transpose(p["pw2_w"][:, :, 0, 0], (1, 0)) * s3[None, :]).astype(f32)   # (Cmid, Cout)
    b3 = (p["pw2_b"] * s3 + t3).reshape(1, Cout).astype(f32)

    x_nhwc = jnp.transpose(x, (0, 2, 3, 1))  # layout plumbing (NCHW -> NHWC)

    out_nhwc = pl.pallas_call(
        _resnext_block_kernel,
        out_shape=jax.ShapeDtypeStruct((B, H, W, Cout), x.dtype),
        grid=(B,),
        in_specs=[
            pl.BlockSpec((None, H, W, Cin), lambda b: (b, 0, 0, 0)),
            pl.BlockSpec((Cin, Cmid), lambda b: (0, 0)),
            pl.BlockSpec((1, Cmid), lambda b: (0, 0)),
            pl.BlockSpec((K, K, Cmid), lambda b: (0, 0, 0)),
            pl.BlockSpec((1, Cmid), lambda b: (0, 0)),
            pl.BlockSpec((Cmid, Cout), lambda b: (0, 0)),
            pl.BlockSpec((1, Cout), lambda b: (0, 0)),
        ],
        out_specs=pl.BlockSpec((None, H, W, Cout), lambda b: (b, 0, 0, 0)),
        scratch_shapes=[pltpu.VMEM((H + 2 * P, W + 2 * P, Cmid), jnp.float32)],
        compiler_params=pltpu.CompilerParams(dimension_semantics=("parallel",)),
    )(x_nhwc, w1, b1, wdw, b2, w3, b3)

    return jnp.transpose(out_nhwc, (0, 3, 1, 2))  # NHWC -> NCHW


def _reference(x, p, *, eps=_BN_EPS):
    """Pure-JAX reference mirroring the PyTorch forward (eval-mode BN)."""
    dn = ("NCHW", "OIHW", "NCHW")
    hp = jax.lax.Precision.HIGHEST

    def bn(y, g, b, m, v):
        c = lambda a: a[None, :, None, None]
        return (y - c(m)) / jnp.sqrt(c(v) + eps) * c(g) + c(b)

    y = jax.lax.conv_general_dilated(x, p["pw1_w"], (1, 1), "SAME",
                                     dimension_numbers=dn, precision=hp)
    y = y + p["pw1_b"][None, :, None, None]
    y = jnp.maximum(bn(y, p["bn1_gamma"], p["bn1_beta"], p["bn1_mean"], p["bn1_var"]), 0.0)

    cmid = p["dw_w"].shape[0]
    y = jax.lax.conv_general_dilated(y, p["dw_w"], (1, 1), "SAME",
                                     dimension_numbers=dn,
                                     feature_group_count=cmid, precision=hp)
    y = y + p["dw_b"][None, :, None, None]
    y = jnp.maximum(bn(y, p["bn2_gamma"], p["bn2_beta"], p["bn2_mean"], p["bn2_var"]), 0.0)

    y = jax.lax.conv_general_dilated(y, p["pw2_w"], (1, 1), "SAME",
                                     dimension_numbers=dn, precision=hp)
    y = y + p["pw2_b"][None, :, None, None]
    y = jnp.maximum(bn(y, p["bn3_gamma"], p["bn3_beta"], p["bn3_mean"], p["bn3_var"]), 0.0)
    return y


if __name__ == "__main__":
    # ResNeXtBlock(in_channels=16, out_channels=32, kernel_size=3, relu)
    B, Cin, H, W = 2, 16, 16, 16
    Cout = 32
    Cmid = Cout // 4
    K = 3
    f32 = jnp.float32

    key = jax.random.PRNGKey(0)
    ks = jax.random.split(key, 20)

    def rnd(k, shape, scale=1.0):
        return jax.random.normal(k, shape, dtype=f32) * scale

    x = rnd(ks[0], (B, Cin, H, W))

    params = dict(
        pw1_w=rnd(ks[1], (Cmid, Cin, 1, 1), 1.0 / math.sqrt(Cin)),
        pw1_b=rnd(ks[2], (Cmid,), 0.1),
        bn1_gamma=1.0 + 0.1 * rnd(ks[3], (Cmid,)),
        bn1_beta=0.1 * rnd(ks[4], (Cmid,)),
        bn1_mean=0.1 * rnd(ks[5], (Cmid,)),
        bn1_var=0.5 + jax.random.uniform(ks[6], (Cmid,), dtype=f32),
        dw_w=rnd(ks[7], (Cmid, 1, K, K), 1.0 / K),
        dw_b=rnd(ks[8], (Cmid,), 0.1),
        bn2_gamma=1.0 + 0.1 * rnd(ks[9], (Cmid,)),
        bn2_beta=0.1 * rnd(ks[10], (Cmid,)),
        bn2_mean=0.1 * rnd(ks[11], (Cmid,)),
        bn2_var=0.5 + jax.random.uniform(ks[12], (Cmid,), dtype=f32),
        pw2_w=rnd(ks[13], (Cout, Cmid, 1, 1), 1.0 / math.sqrt(Cmid)),
        pw2_b=rnd(ks[14], (Cout,), 0.1),
        bn3_gamma=1.0 + 0.1 * rnd(ks[15], (Cout,)),
        bn3_beta=0.1 * rnd(ks[16], (Cout,)),
        bn3_mean=0.1 * rnd(ks[17], (Cout,)),
        bn3_var=0.5 + jax.random.uniform(ks[18], (Cout,), dtype=f32),
    )

    out = resnext_block(x, params)
    out = jax.block_until_ready(out)

    ref = _reference(x, params)
    assert out.shape == (B, Cout, H, W), out.shape
    max_err = float(jnp.max(jnp.abs(out - ref)))
    assert jnp.allclose(out, ref, atol=1e-3, rtol=1e-3), max_err

    print("KERNEL_OK")
</pallas_src>

<mosaic_0001>
module attributes {stable_mosaic.version = 11 : i64} {
  func.func @_resnext_block_kernel(%arg0: i32, %arg1: memref<1x16x16x16xf32, #tpu.memory_space<vmem>>, %arg2: memref<16x8xf32, #tpu.memory_space<vmem>>, %arg3: memref<1x8xf32, #tpu.memory_space<vmem>>, %arg4: memref<3x3x8xf32, #tpu.memory_space<vmem>>, %arg5: memref<1x8xf32, #tpu.memory_space<vmem>>, %arg6: memref<8x32xf32, #tpu.memory_space<vmem>>, %arg7: memref<1x32xf32, #tpu.memory_space<vmem>>, %arg8: memref<1x16x16x32xf32, #tpu.memory_space<vmem>>, %arg9: memref<18x18x8xf32, #tpu.memory_space<vmem>>) attributes {dimension_semantics = [#tpu.dimension_semantics<parallel>], iteration_bounds = array<i64: 2>, scalar_prefetch = 0 : i64, scratch_operands = 1 : i64, tpu.core_type = #tpu.core_type<tc>, window_params = [{transform_indices = @transform_0, window_bounds = array<i64: 1, 16, 16, 16>}, {pipeline_mode = #tpu.pipeline_mode<synchronous>, transform_indices = @transform_1, window_bounds = array<i64: 16, 8>}, {pipeline_mode = #tpu.pipeline_mode<synchronous>, transform_indices = @transform_2, window_bounds = array<i64: 1, 8>}, {pipeline_mode = #tpu.pipeline_mode<synchronous>, transform_indices = @transform_3, window_bounds = array<i64: 3, 3, 8>}, {pipeline_mode = #tpu.pipeline_mode<synchronous>, transform_indices = @transform_4, window_bounds = array<i64: 1, 8>}, {pipeline_mode = #tpu.pipeline_mode<synchronous>, transform_indices = @transform_5, window_bounds = array<i64: 8, 32>}, {pipeline_mode = #tpu.pipeline_mode<synchronous>, transform_indices = @transform_6, window_bounds = array<i64: 1, 32>}, {transform_indices = @transform_7, window_bounds = array<i64: 1, 16, 16, 32>}]} {
    %c0 = arith.constant 0 : index
    %c0_0 = arith.constant 0 : index
    %c0_1 = arith.constant 0 : index
    %c0_2 = arith.constant 0 : index
    %0 = vector.load %arg1[%c0, %c0_0, %c0_1, %c0_2] : memref<1x16x16x16xf32, #tpu.memory_space<vmem>>, vector<1x16x16x16xf32>
    %1 = vector.shape_cast %0 : vector<1x16x16x16xf32> to vector<16x16x16xf32>
    %2 = vector.shape_cast %1 : vector<16x16x16xf32> to vector<256x16xf32>
    %c0_3 = arith.constant 0 : index
    %c0_4 = arith.constant 0 : index
    %3 = vector.load %arg2[%c0_3, %c0_4] : memref<16x8xf32, #tpu.memory_space<vmem>>, vector<16x8xf32>
    %cst = arith.constant dense<0.000000e+00> : vector<256x8xf32>
    %4 = tpu.matmul %2, %3, %cst {dimension_numbers = #tpu.dot_dimension_numbers<[1], [0], [0], [1], [0, 0, 1, 1], [], []>} : vector<256x16xf32>, vector<16x8xf32>, vector<256x8xf32> -> vector<256x8xf32>
    %c0_5 = arith.constant 0 : index
    %c0_6 = arith.constant 0 : index
    %5 = vector.load %arg3[%c0_5, %c0_6] : memref<1x8xf32, #tpu.memory_space<vmem>>, vector<1x8xf32>
    %6 = vector.broadcast %5 : vector<1x8xf32> to vector<256x8xf32>
    %7 = arith.addf %4, %6 : vector<256x8xf32>
    %cst_7 = arith.constant 0.000000e+00 : f32
    %8 = vector.broadcast %cst_7 : f32 to vector<256x8xf32>
    %9 = arith.maximumf %7, %8 : vector<256x8xf32>
    %cst_8 = arith.constant 0.000000e+00 : f32
    %10 = vector.broadcast %cst_8 : f32 to vector<18x18x8xf32>
    %c0_9 = arith.constant 0 : index
    %c0_10 = arith.constant 0 : index
    %c0_11 = arith.constant 0 : index
    %11 = vector.load %arg9[%c0_9, %c0_10, %c0_11] : memref<18x18x8xf32, #tpu.memory_space<vmem>>, vector<18x18x8xf32>
    tpu.vector_store %arg9[%c0_9, %c0_10, %c0_11], %10 {strides = array<i32>} : memref<18x18x8xf32, #tpu.memory_space<vmem>>, vector<18x18x8xf32>,
    %12 = vector.shape_cast %9 : vector<256x8xf32> to vector<16x16x8xf32>
    %c1 = arith.constant 1 : index
    %c1_12 = arith.constant 1 : index
    %c0_13 = arith.constant 0 : index
    %13 = vector.load %arg9[%c1, %c1_12, %c0_13] : memref<18x18x8xf32, #tpu.memory_space<vmem>>, vector<16x16x8xf32>
    tpu.vector_store %arg9[%c1, %c1_12, %c0_13], %12 {strides = array<i32>} : memref<18x18x8xf32, #tpu.memory_space<vmem>>, vector<16x16x8xf32>,
    %cst_14 = arith.constant 0.000000e+00 : f32
    %14 = vector.broadcast %cst_14 : f32 to vector<16x16x8xf32>
    %c0_15 = arith.constant 0 : index
    %c0_16 = arith.constant 0 : index
    %c0_17 = arith.constant 0 : index
    %15 = vector.load %arg9[%c0_15, %c0_16, %c0_17] : memref<18x18x8xf32, #tpu.memory_space<vmem>>, vector<16x16x8xf32>
    %c0_18 = arith.constant 0 : index
    %c0_19 = arith.constant 0 : index
    %c0_20 = arith.constant 0 : index
    %16 = vector.load %arg4[%c0_18, %c0_19, %c0_20] : memref<3x3x8xf32, #tpu.memory_space<vmem>>, vector<1x1x8xf32>
    %17 = vector.broadcast %16 : vector<1x1x8xf32> to vector<16x16x8xf32>
    %18 = arith.mulf %15, %17 : vector<16x16x8xf32>
    %19 = arith.addf %14, %18 : vector<16x16x8xf32>
    %c0_21 = arith.constant 0 : index
    %c1_22 = arith.constant 1 : index
    %c0_23 = arith.constant 0 : index
    %20 = vector.load %arg9[%c0_21, %c1_22, %c0_23] : memref<18x18x8xf32, #tpu.memory_space<vmem>>, vector<16x16x8xf32>
    %c0_24 = arith.constant 0 : index
    %c1_25 = arith.constant 1 : index
    %c0_26 = arith.constant 0 : index
    %21 = vector.load %arg4[%c0_24, %c1_25, %c0_26] : memref<3x3x8xf32, #tpu.memory_space<vmem>>, vector<1x1x8xf32>
    %22 = vector.broadcast %21 : vector<1x1x8xf32> to vector<16x16x8xf32>
    %23 = arith.mulf %20, %22 : vector<16x16x8xf32>
    %24 = arith.addf %19, %23 : vector<16x16x8xf32>
    %c0_27 = arith.constant 0 : index
    %c2 = arith.constant 2 : index
    %c0_28 = arith.constant 0 : index
    %25 = vector.load %arg9[%c0_27, %c2, %c0_28] : memref<18x18x8xf32, #tpu.memory_space<vmem>>, vector<16x16x8xf32>
    %c0_29 = arith.constant 0 : index
    %c2_30 = arith.constant 2 : index
    %c0_31 = arith.constant 0 : index
    %26 = vector.load %arg4[%c0_29, %c2_30, %c0_31] : memref<3x3x8xf32, #tpu.memory_space<vmem>>, vector<1x1x8xf32>
    %27 = vector.broadcast %26 : vector<1x1x8xf32> to vector<16x16x8xf32>
    %28 = arith.mulf %25, %27 : vector<16x16x8xf32>
    %29 = arith.addf %24, %28 : vector<16x16x8xf32>
    %c1_32 = arith.constant 1 : index
    %c0_33 = arith.constant 0 : index
    %c0_34 = arith.constant 0 : index
    %30 = vector.load %arg9[%c1_32, %c0_33, %c0_34] : memref<18x18x8xf32, #tpu.memory_space<vmem>>, vector<16x16x8xf32>
    %c1_35 = arith.constant 1 : index
    %c0_36 = arith.constant 0 : index
    %c0_37 = arith.constant 0 : index
    %31 = vector.load %arg4[%c1_35, %c0_36, %c0_37] : memref<3x3x8xf32, #tpu.memory_space<vmem>>, vector<1x1x8xf32>
    %32 = vector.broadcast %31 : vector<1x1x8xf32> to vector<16x16x8xf32>
    %33 = arith.mulf %30, %32 : vector<16x16x8xf32>
    %34 = arith.addf %29, %33 : vector<16x16x8xf32>
    %c1_38 = arith.constant 1 : index
    %c1_39 = arith.constant 1 : index
    %c0_40 = arith.constant 0 : index
    %35 = vector.load %arg9[%c1_38, %c1_39, %c0_40] : memref<18x18x8xf32, #tpu.memory_space<vmem>>, vector<16x16x8xf32>
    %c1_41 = arith.constant 1 : index
    %c1_42 = arith.constant 1 : index
    %c0_43 = arith.constant 0 : index
    %36 = vector.load %arg4[%c1_41, %c1_42, %c0_43] : memref<3x3x8xf32, #tpu.memory_space<vmem>>, vector<1x1x8xf32>
    %37 = vector.broadcast %36 : vector<1x1x8xf32> to vector<16x16x8xf32>
    %38 = arith.mulf %35, %37 : vector<16x16x8xf32>
    %39 = arith.addf %34, %38 : vector<16x16x8xf32>
    %c1_44 = arith.constant 1 : index
    %c2_45 = arith.constant 2 : index
    %c0_46 = arith.constant 0 : index
    %40 = vector.load %arg9[%c1_44, %c2_45, %c0_46] : memref<18x18x8xf32, #tpu.memory_space<vmem>>, vector<16x16x8xf32>
    %c1_47 = arith.constant 1 : index
    %c2_48 = arith.constant 2 : index
    %c0_49 = arith.constant 0 : index
    %41 = vector.load %arg4[%c1_47, %c2_48, %c0_49] : memref<3x3x8xf32, #tpu.memory_space<vmem>>, vector<1x1x8xf32>
    %42 = vector.broadcast %41 : vector<1x1x8xf32> to vector<16x16x8xf32>
    %43 = arith.mulf %40, %42 : vector<16x16x8xf32>
    %44 = arith.addf %39, %43 : vector<16x16x8xf32>
    %c2_50 = arith.constant 2 : index
    %c0_51 = arith.constant 0 : index
    %c0_52 = arith.constant 0 : index
    %45 = vector.load %arg9[%c2_50, %c0_51, %c0_52] : memref<18x18x8xf32, #tpu.memory_space<vmem>>, vector<16x16x8xf32>
    %c2_53 = arith.constant 2 : index
    %c0_54 = arith.constant 0 : index
    %c0_55 = arith.constant 0 : index
    %46 = vector.load %arg4[%c2_53, %c0_54, %c0_55] : memref<3x3x8xf32, #tpu.memory_space<vmem>>, vector<1x1x8xf32>
    %47 = vector.broadcast %46 : vector<1x1x8xf32> to vector<16x16x8xf32>
    %48 = arith.mulf %45, %47 : vector<16x16x8xf32>
    %49 = arith.addf %44, %48 : vector<16x16x8xf32>
    %c2_56 = arith.constant 2 : index
    %c1_57 = arith.constant 1 : index
    %c0_58 = arith.constant 0 : index
    %50 = vector.load %arg9[%c2_56, %c1_57, %c0_58] : memref<18x18x8xf32, #tpu.memory_space<vmem>>, vector<16x16x8xf32>
    %c2_59 = arith.constant 2 : index
    %c1_60 = arith.constant 1 : index
    %c0_61 = arith.constant 0 : index
    %51 = vector.load %arg4[%c2_59, %c1_60, %c0_61] : memref<3x3x8xf32, #tpu.memory_space<vmem>>, vector<1x1x8xf32>
    %52 = vector.broadcast %51 : vector<1x1x8xf32> to vector<16x16x8xf32>
    %53 = arith.mulf %50, %52 : vector<16x16x8xf32>
    %54 = arith.addf %49, %53 : vector<16x16x8xf32>
    %c2_62 = arith.constant 2 : index
    %c2_63 = arith.constant 2 : index
    %c0_64 = arith.constant 0 : index
    %55 = vector.load %arg9[%c2_62, %c2_63, %c0_64] : memref<18x18x8xf32, #tpu.memory_space<vmem>>, vector<16x16x8xf32>
    %c2_65 = arith.constant 2 : index
    %c2_66 = arith.constant 2 : index
    %c0_67 = arith.constant 0 : index
    %56 = vector.load %arg4[%c2_65, %c2_66, %c0_67] : memref<3x3x8xf32, #tpu.memory_space<vmem>>, vector<1x1x8xf32>
    %57 = vector.broadcast %56 : vector<1x1x8xf32> to vector<16x16x8xf32>
    %58 = arith.mulf %55, %57 : vector<16x16x8xf32>
    %59 = arith.addf %54, %58 : vector<16x16x8xf32>
    %c0_68 = arith.constant 0 : index
    %c0_69 = arith.constant 0 : index
    %60 = vector.load %arg5[%c0_68, %c0_69] : memref<1x8xf32, #tpu.memory_space<vmem>>, vector<1x8xf32>
    %61 = vector.shape_cast %60 : vector<1x8xf32> to vector<1x1x8xf32>
    %62 = vector.broadcast %61 : vector<1x1x8xf32> to vector<16x16x8xf32>
    %63 = arith.addf %59, %62 : vector<16x16x8xf32>
    %cst_70 = arith.constant 0.000000e+00 : f32
    %64 = vector.broadcast %cst_70 : f32 to vector<16x16x8xf32>
    %65 = arith.maximumf %63, %64 : vector<16x16x8xf32>
    %66 = vector.shape_cast %65 : vector<16x16x8xf32> to vector<256x8xf32>
    %c0_71 = arith.constant 0 : index
    %c0_72 = arith.constant 0 : index
    %67 = vector.load %arg6[%c0_71, %c0_72] : memref<8x32xf32, #tpu.memory_space<vmem>>, vector<8x32xf32>
    %cst_73 = arith.constant dense<0.000000e+00> : vector<256x32xf32>
    %68 = tpu.matmul %66, %67, %cst_73 {dimension_numbers = #tpu.dot_dimension_numbers<[1], [0], [0], [1], [0, 0, 1, 1], [], []>} : vector<256x8xf32>, vector<8x32xf32>, vector<256x32xf32> -> vector<256x32xf32>
    %c0_74 = arith.constant 0 : index
    %c0_75 = arith.constant 0 : index
    %69 = vector.load %arg7[%c0_74, %c0_75] : memref<1x32xf32, #tpu.memory_space<vmem>>, vector<1x32xf32>
    %70 = vector.broadcast %69 : vector<1x32xf32> to vector<256x32xf32>
    %71 = arith.addf %68, %70 : vector<256x32xf32>
    %cst_76 = arith.constant 0.000000e+00 : f32
    %72 = vector.broadcast %cst_76 : f32 to vector<256x32xf32>
    %73 = arith.maximumf %71, %72 : vector<256x32xf32>
    %74 = vector.shape_cast %73 : vector<256x32xf32> to vector<16x16x32xf32>
    %c0_77 = arith.constant 0 : index
    %c0_78 = arith.constant 0 : index
    %c0_79 = arith.constant 0 : index
    %c0_80 = arith.constant 0 : index
    %75 = vector.load %arg8[%c0_77, %c0_78, %c0_79, %c0_80] : memref<1x16x16x32xf32, #tpu.memory_space<vmem>>, vector<1x16x16x32xf32>
    %76 = vector.shape_cast %75 : vector<1x16x16x32xf32> to vector<16x16x32xf32>
    %77 = vector.shape_cast %74 : vector<16x16x32xf32> to vector<1x16x16x32xf32>
    tpu.vector_store %arg8[%c0_77, %c0_78, %c0_79, %c0_80], %77 {strides = array<i32>} : memref<1x16x16x32xf32, #tpu.memory_space<vmem>>, vector<1x16x16x32xf32>,
    return
  }
  func.func @transform_0(%arg0: i32) -> (i32, i32, i32, i32) {
    %c0_i32 = arith.constant 0 : i32
    %c0_i32_0 = arith.constant 0 : i32
    %c0_i32_1 = arith.constant 0 : i32
    %c0_i32_2 = arith.constant 0 : i32
    return %arg0, %c0_i32, %c0_i32_0, %c0_i32_1 : i32, i32, i32, i32
  }
  func.func @transform_1(%arg0: i32) -> (i32, i32) {
    %c0_i32 = arith.constant 0 : i32
    %c0_i32_0 = arith.constant 0 : i32
    %c0_i32_1 = arith.constant 0 : i32
    return %c0_i32, %c0_i32_0 : i32, i32
  }
  func.func @transform_2(%arg0: i32) -> (i32, i32) {
    %c0_i32 = arith.constant 0 : i32
    %c0_i32_0 = arith.constant 0 : i32
    %c0_i32_1 = arith.constant 0 : i32
    return %c0_i32, %c0_i32_0 : i32, i32
  }
  func.func @transform_3(%arg0: i32) -> (i32, i32, i32) {
    %c0_i32 = arith.constant 0 : i32
    %c0_i32_0 = arith.constant 0 : i32
    %c0_i32_1 = arith.constant 0 : i32
    %c0_i32_2 = arith.constant 0 : i32
    return %c0_i32, %c0_i32_0, %c0_i32_1 : i32, i32, i32
  }
  func.func @transform_4(%arg0: i32) -> (i32, i32) {
    %c0_i32 = arith.constant 0 : i32
    %c0_i32_0 = arith.constant 0 : i32
    %c0_i32_1 = arith.constant 0 : i32
    return %c0_i32, %c0_i32_0 : i32, i32
  }
  func.func @transform_5(%arg0: i32) -> (i32, i32) {
    %c0_i32 = arith.constant 0 : i32
    %c0_i32_0 = arith.constant 0 : i32
    %c0_i32_1 = arith.constant 0 : i32
    return %c0_i32, %c0_i32_0 : i32, i32
  }
  func.func @transform_6(%arg0: i32) -> (i32, i32) {
    %c0_i32 = arith.constant 0 : i32
    %c0_i32_0 = arith.constant 0 : i32
    %c0_i32_1 = arith.constant 0 : i32
    return %c0_i32, %c0_i32_0 : i32, i32
  }
  func.func @transform_7(%arg0: i32) -> (i32, i32, i32, i32) {
    %c0_i32 = arith.constant 0 : i32
    %c0_i32_0 = arith.constant 0 : i32
    %c0_i32_1 = arith.constant 0 : i32
    %c0_i32_2 = arith.constant 0 : i32
    return %arg0, %c0_i32, %c0_i32_0, %c0_i32_1 : i32, i32, i32, i32
  }
}

</mosaic_0001>

<bundles_post_ra>
// kernel: tpu_custom_call.1
= control target key start
LH: loop header
LB: loop body
LE: loop exit
PB: predicated region body
PF: predicated region fallthrough
CT: control target
= control target key end

     0   :  { %12 = vsyncpa [#allocation4], 0  ;;  %s3976_s0 = inlined_call_operand.hbm [shape: f32[2,16,16,16], index: 0, kind: input, shape index: {}]   ;;  %s3977_s1 = inlined_call_operand.vmem [shape: f32[16,8], index: 1, kind: input, shape index: {}]   ;;  %s3978_s2 = inlined_call_operand.vmem [shape: f32[1,8], index: 2, kind: input, shape index: {}]   ;;  %s3979_s3 = inlined_call_operand.vmem [shape: f32[3,3,8], index: 3, kind: input, shape index: {}]   ;;  %s3980_s4 = inlined_call_operand.vmem [shape: f32[1,8], index: 4, kind: input, shape index: {}]   ;;  %s3981_s5 = inlined_call_operand.vmem [shape: f32[8,32], index: 5, kind: input, shape index: {}]   ;;  %s3982_s6 = inlined_call_operand.vmem [shape: f32[1,32], index: 6, kind: input, shape index: {}]   ;;  %s3983_s7 = inlined_call_operand.hbm [shape: f32[2,16,16,32], index: 7, kind: output, shape index: {}]  }
   0x1   :  { %14 = vsyncpa [#allocation4 + $0x1], 0 }
   0x2   :  { %15 = vsyncpa [#allocation5], 0 }
   0x3   :  { %17 = vsyncpa [#allocation5 + $0x1], 0  ;;  %s2722_s24 = smov 0   ;;  %s2724_s25 = smov 0  }
   0x4   :  { %s2726_s26 = smov 0   ;;  %s2728_s27 = smov 0  }
   0x5 LB: > { %s2743_s28 = sadd.s32 4294967295, %s2673_s27   ;;  %s2245_s29 = sadd.s32 4294967294, %s2673_s27   ;;  %s2673_s27 = sphi %s2728_s27, %s3996_s27   ;;  %s2669_s26 = sphi %s2726_s26, %s3995_s26   ;;  %s2665_s25 = sphi %s2724_s25, %s3994_s25   ;;  %s2661_s24 = sphi %s2722_s24, %s3993_s24  }
   0x6   : > { %s2747_s30 = sadd.s32 1, %s2673_s27   ;;  %s30_s8 = sadd.s32 1, %s2669_s26 }
   0x7   : > { %s27_s9 = ssub.s32 %s2673_s27, %s2747_s30  ;;  %p37_p0 = scmp.ne.s32.totalorder %s2669_s26, %s2665_s25 }
   0x8   : > { %p28_p1 = scmp.eq.s32.totalorder %s27_s9, 0  ;;  %p38_p2 = scmp.eq.s32.totalorder %s2673_s27, 0 }
   0x9   : > { %p43_p3 = scmp.ne.s32.totalorder %s2665_s25, %s2661_s24  ;;  %p44_p4 = scmp.eq.s32.totalorder %s2743_s28, 0 }
   0xa   : > { %s2759_s10 = scalar_select %p28_p1, %s2669_s26, %s30_s8  }
   0xb   : > { %p2761_p5 = por %p38_p2, %p37_p0  ;;  %p2765_p6 = por %p44_p4, %p43_p3 }
   0xc   : > { %p193_p7 = scmp.eq.s32.totalorder %s2743_s28, 1  ;;  %p199_p8 = scmp.eq.s32.totalorder %s2245_s29, 1 }
   0xd   : > { %p2528_p10 = scmp.lt.s32.totalorder %s2673_s27, 2  ;;  %s237_s15 = sand.u32 1, %s2669_s26  }
   0xe   : > { %p2772_p11 = por %p193_p7, %p37_p0  ;;  %p2776_p12 = por %p199_p8, %p43_p3 }
   0xf   : > { %s2341_s16 = sshll.u32 %s2673_s27, 12  ;;  %s2248_s17 = sshll.u32 %s237_s15, 8 }
  0x10   : > { %s3987_s13 = scalar_select %p2772_p11, 1, 0 }
  0x11   : > { %s3988_s14 = scalar_select %p2776_p12, 1, 0 }
  0x12   : > { %s2785_s20 = scalar_lea.hbm %s3976_s0, %s2341_s16  ;;  %s241_s21 = scalar_lea.vmem [#allocation3], %s2248_s17 }
  0x13   : > { %s248_s22 = sshll.u32 %s241_s21, 4  ;;  %p2789_p13 = pnand %p2528_p10, %p2761_p5  ;;  %s2793_s22 = int_to_ptr.vmem [resolvable:$true] %s248_s22 }
  0x14   : > { %s2795_s29 = scalar_lea.sflag [#allocation4], %s237_s15  ;;  %s2577_s8 = scalar_lea.hbm %s2785_s20, 4096 }
  0x15   : > { %p2578_p0 = scmp.ne.s32.totalorder %s2785_s20, %s2577_s8  ;;  %p2579_p1 = pneg %p2789_p13 }
  0x16   : > { %s2582_s16 = scalar_lea.hbm %s3976_s0, 8192  ;;  %p2583_p4 = scmp.lt.u32.totalorder %s2785_s20, %s3976_s0 }
  0x17   : > { %p2580_p2 = pnand %p2579_p1, %p2578_p0  ;;  %p2584_p5 = scmp.lt.u32.totalorder %s2582_s16, %s2577_s8 }
  0x18   : > { %p2586_p8 = scmp.lt.u32.totalorder %s2577_s8, %s2785_s20 }
  0x19   : > { %p2581_p3 = pneg %p2580_p2  ;;  %p2585_p7 = por %p2584_p5, %p2583_p4 }
  0x1b   : > { %p2587_p10 = por %p2586_p8, %p2585_p7 }
  0x1d   : > { %p2588_p9 = pnand %p2587_p10, %p2581_p3 }
  0x1f   : > { %2591 = shalt.err (!%p2588_p9)
}
  0x20   : > { %s2592_s15 = scalar_lea.vmem %s2793_s22, 4096  ;;  %s2675_s19 = smov [#allocation3]  }
  0x21   : > { %p2593_p0 = scmp.ne.s32.totalorder %s2793_s22, %s2592_s15  ;;  %s2597_s21 = sshll.u32 %s2675_s19, 4  ;;  %s2598_s21 = int_to_ptr.vmem [resolvable:$false] %s2597_s21 }
  0x22   : > { %s2599_s9 = scalar_lea.vmem %s2598_s21, 8192  ;;  %p2600_p11 = scmp.lt.s32.totalorder %s2793_s22, %s2598_s21 }
  0x23   : > { %p2595_p2 = pnand %p2593_p0, %p2579_p1  ;;  %p2601_p4 = scmp.lt.s32.totalorder %s2599_s9, %s2592_s15 }
  0x25   : > { %p2596_p12 = pneg %p2595_p2  ;;  %p2602_p5 = por %p2601_p4, %p2600_p11 }
  0x27   : > { %p2603_p7 = pnand %p2602_p5, %p2596_p12 }
  0x29   : > { %2606 = shalt.err (!%p2603_p7)
}
  0x2a   : > { %s2676_s8 = smov 128   ;;  %s2677_s11 = smov 8  }
  0x2b   : > { %2523 = dma.hbm_to_vmem [thread:$0]  (!%p2789_p13), %s2785_s20, 4096, %s2793_s22, %s2795_s29, %s2676_s8, %s2676_s8, %s2677_s11  }
  0x2c   : > { %p2251_p9 = scmp.ge.s32.totalorder %s2673_s27, 1  ;;  %p256_p1 = scmp.lt.s32.totalorder %s2673_s27, 3 }
  0x2e   : > { %p257_p3 = pnand %p2251_p9, %p256_p1 }
  0x2f   : > { %s2826_s16 = sand.u32 (!%p257_p3), 1, %s2665_s25  }
  0x30   : > { %260 = sbr.rel (%p257_p3) target bundleno = 693 (0x2b5), region = 48  ;;  %s2252_s17 = sshll.u32 (!%p257_p3), %s2826_s16, 8 }
  0x31   : > { %s263_s18 = scalar_lea.sflag (!%p257_p3), [#allocation4], %s2826_s16  ;;  %s2832_s15 = scalar_lea.vmem (!%p257_p3), [#allocation3], %s2252_s17 }
  0x37   : > { %2652 = dma.done.wait (%p2765_p6), %s263_s18, 4096  }
  0x38   : > { %2654 = vsyncadd (%p2765_p6), %s263_s18, 4294963200  ;;  %vm338_vm0 = vcmask 130048   ;;  %v329_v0 = vld [vmem:[%s3977_s1] sm:$0xff]  ;;  %v330_v1 = vld [vmem:[%s3977_s1 + $0x8] sm:$0xff]  ;;  %vm692_vm1 = vcmask 64512   ;;  %vm695_vm2 = vcmask 58368  }
  0x39   : > { %v297_v2 = vld [vmem:[%s2832_s15] sm:$0xff]  ;;  %v2512_v3 = vpack.c.bf16 %v330_v1, %v329_v0  ;;  %v298_v4 = vld [vmem:[%s2832_s15 + $0x8] sm:$0xff]  ;;  %v299_v5 = vld [vmem:[%s2832_s15 + $0x10] sm:$0xff]  ;;  %v2678_v35 = vmov 0.0   ;;  %vm2125_vm3 = vcmask 261120   ;;  %s3829_s23 = scalar_lea.vmem [#allocation6], %s2252_s17 }
  0x3a   : > { %2414 = vmatprep.mubr.msk.f32.mxu0 %vm338_vm0, %v297_v2  ;;  %v300_v6 = vld [vmem:[%s2832_s15 + $0x18] sm:$0xff]  ;;  %v301_v7 = vld [vmem:[%s2832_s15 + $0x20] sm:$0xff]  ;;  %v302_v8 = vld [vmem:[%s2832_s15 + $0x28] sm:$0xff]  ;;  %698 = vst.msk [vmem:[#allocation2 + $0x20] sm:$0xff] %vm692_vm1, %v2678_v35  ;;  %s2342_s17 = sshll.u32 %s2743_s28, 12  ;;  %s2172_s29 = sshll.u32 %s3829_s23, 4  ;;  %s3928_s29 = int_to_ptr.vmem [resolvable:$true] %s2172_s29 }
  0x3b   : > { %2513 = vmatprep.subr.bf16.mxu0 %v2512_v3  ;;  %v303_v9 = vld [vmem:[%s2832_s15 + $0x30] sm:$0xff]  ;;  %v304_v10 = vld [vmem:[%s2832_s15 + $0x38] sm:$0xff]  ;;  %v305_v11 = vld [vmem:[%s2832_s15 + $0x40] sm:$0xff]  ;;  %699 = vst.msk [vmem:[#allocation2 + $0x28] sm:$0x3] %vm695_vm2, %v2678_v35  ;;  %s3926_s21 = scalar_lea.hbm %s3983_s7, %s2342_s17  ;;  %s2159_s28 = scalar_lea.sflag [#allocation5], %s2826_s16 }
  0x3c   : > { %2515 = vmatpush3.bf16.msra.mxu0 %v2512_v3  ;;  %v306_v12 = vld [vmem:[%s2832_s15 + $0x48] sm:$0xff]  ;;  %v307_v13 = vld [vmem:[%s2832_s15 + $0x50] sm:$0xff]  ;;  %v308_v14 = vld [vmem:[%s2832_s15 + $0x58] sm:$0xff]  ;;  %693 = vst.msk [vmem:[#allocation2] sm:$0xff] %vm692_vm1, %v2678_v35  ;;  %s2607_s9 = scalar_lea.vmem %s3928_s29, 4096  ;;  %p3990_p11 = scmp.ne.s32.totalorder %s3987_s13, 0 }
  0x3d   : > { %v309_v15 = vld [vmem:[%s2832_s15 + $0x60] sm:$0xff]  ;;  %v310_v16 = vld [vmem:[%s2832_s15 + $0x68] sm:$0xff]  ;;  %v311_v17 = vld [vmem:[%s2832_s15 + $0x70] sm:$0xff]  ;;  %694 = vst.msk [vmem:[#allocation2 + $0x8] sm:$0xff] %vm692_vm1, %v2678_v35  ;;  %p2608_p6 = scmp.ne.s32.totalorder %s3928_s29, %s2607_s9  ;;  %s2679_s8 = smov [#allocation6]  }
  0x3e   : > { %v312_v18 = vld [vmem:[%s2832_s15 + $0x78] sm:$0xff]  ;;  %v313_v19 = vld [vmem:[%s2832_s15 + $0x80] sm:$0xff]  ;;  %v314_v20 = vld [vmem:[%s2832_s15 + $0x88] sm:$0xff]  ;;  %696 = vst.msk [vmem:[#allocation2 + $0x10] sm:$0x3] %vm695_vm2, %v2678_v35  ;;  %s2611_s11 = sshll.u32 %s2679_s8, 4  ;;  %s2612_s11 = int_to_ptr.vmem [resolvable:$false] %s2611_s11 }
  0x3f   : > { %2415 = vmatmul.mubr.msk.f32.vlgmr.msra.gmra.mrb[0].mxu0 %vm338_vm0, %v298_v4  ;;  %v315_v21 = vld [vmem:[%s2832_s15 + $0x90] sm:$0xff]  ;;  %v316_v22 = vld [vmem:[%s2832_s15 + $0x98] sm:$0xff]  ;;  %v317_v23 = vld [vmem:[%s2832_s15 + $0xa0] sm:$0xff]  ;;  %697 = vst.msk [vmem:[#allocation2 + $0x18] sm:$0xff] %vm692_vm1, %v2678_v35  ;;  %p2609_p12 = pnand %p2608_p6, %p3990_p11  ;;  %s2613_s18 = scalar_lea.vmem %s2612_s11, 8192 }
  0x40   : > { %2417 = vmatprep.mubr.msk.f32.mxu0 %vm338_vm0, %v299_v5  ;;  %v318_v24 = vld [vmem:[%s2832_s15 + $0xa8] sm:$0xff]  ;;  %v319_v25 = vld [vmem:[%s2832_s15 + $0xb0] sm:$0xff]  ;;  %v320_v26 = vld [vmem:[%s2832_s15 + $0xb8] sm:$0xff]  ;;  %700 = vst.msk [vmem:[#allocation2 + $0x30] sm:$0xff] %vm692_vm1, %v2678_v35  ;;  %p2614_p8 = scmp.lt.s32.totalorder %s3928_s29, %s2612_s11  ;;  %p2615_p10 = scmp.lt.s32.totalorder %s2613_s18, %s2607_s9 }
  0x41   : > { %v321_v27 = vld [vmem:[%s2832_s15 + $0xc0] sm:$0xff]  ;;  %v322_v28 = vld [vmem:[%s2832_s15 + $0xc8] sm:$0xff]  ;;  %v323_v29 = vld [vmem:[%s2832_s15 + $0xd0] sm:$0xff]  ;;  %701 = vst.msk [vmem:[#allocation2 + $0x38] sm:$0xff] %vm692_vm1, %v2678_v35  ;;  %p2610_p13 = pneg %p2609_p12 }
  0x42   : > { %v324_v30 = vld [vmem:[%s2832_s15 + $0xd8] sm:$0xff]  ;;  %v325_v31 = vld [vmem:[%s2832_s15 + $0xe0] sm:$0xff]  ;;  %v326_v32 = vld [vmem:[%s2832_s15 + $0xe8] sm:$0xff]  ;;  %702 = vst.msk [vmem:[#allocation2 + $0x40] sm:$0x3] %vm695_vm2, %v2678_v35  ;;  %p2616_p0 = por %p2615_p10, %p2614_p8 }
  0x43   : > { %2418 = vmatmul.mubr.msk.f32.gmra.mrb[2].mxu0 %vm338_vm0, %v300_v6  ;;  %v327_v33 = vld [vmem:[%s2832_s15 + $0xf0] sm:$0xff]  ;;  %v328_v34 = vld [vmem:[%s2832_s15 + $0xf8] sm:$0xff]  ;;  %703 = vst.msk [vmem:[#allocation2 + $0x48] sm:$0xff] %vm692_vm1, %v2678_v35  ;;  %704 = vst.msk [vmem:[#allocation2 + $0x50] sm:$0xff] %vm692_vm1, %v2678_v35 }
  0x44   : > { %2420 = vmatprep.mubr.msk.f32.mxu0 %vm338_vm0, %v301_v7  ;;  %705 = vst.msk [vmem:[#allocation2 + $0x58] sm:$0x3] %vm695_vm2, %v2678_v35  ;;  %708 = vst.msk [vmem:[#allocation2 + $0x70] sm:$0x3] %vm695_vm2, %v2678_v35  ;;  %v1764_v36 = vld [vmem:[%s3981_s5] sm:$0xff]  ;;  %v782_v46 = vld [vmem:[#allocation2 + $0x8] sm:$0xff]  ;;  %p2617_p2 = pnand %p2616_p0, %p2610_p13 }
  0x45   : > { %706 = vst.msk [vmem:[#allocation2 + $0x60] sm:$0xff] %vm692_vm1, %v2678_v35  ;;  %707 = vst.msk [vmem:[#allocation2 + $0x68] sm:$0xff] %vm692_vm1, %v2678_v35  ;;  %2462 = vmatprep.subr.mxu1 %v1764_v36  ;;  %v2968_v37 = vld [vmem:[%s3978_s2] ss:$0 sm:$0xff]  ;;  %v882_v43 = vld [vmem:[#allocation2 + $0x1] sm:$0xff] }
  0x46   : > { %709 = vst.msk [vmem:[#allocation2 + $0x78] sm:$0xff] %vm692_vm1, %v2678_v35  ;;  %710 = vst.msk [vmem:[#allocation2 + $0x80] sm:$0xff] %vm692_vm1, %v2678_v35  ;;  %2463 = vmatpush3.msra.mxu1 %v1764_v36  ;;  %v781_v39 = vld [vmem:[#allocation2] sm:$0xff]  ;;  %v883_v47 = vld [vmem:[#allocation2 + $0x9] sm:$0xff] }
  0x47   : > { %2421 = vmatmul.mubr.msk.f32.gmra.mrb[4].mxu0 %vm338_vm0, %v302_v8  ;;  %711 = vst.msk [vmem:[#allocation2 + $0x88] sm:$0x3] %vm695_vm2, %v2678_v35  ;;  %714 = vst.msk [vmem:[#allocation2 + $0xa0] sm:$0x3] %vm695_vm2, %v2678_v35  ;;  %v2974_v42 = vld [vmem:[%s3979_s3] ss:$0 sm:$0xff] }
  0x48   : > { %2423 = vmatprep.mubr.msk.f32.mxu0 %vm338_vm0, %v303_v9  ;;  %712 = vst.msk [vmem:[#allocation2 + $0x90] sm:$0xff] %vm692_vm1, %v2678_v35  ;;  %713 = vst.msk [vmem:[#allocation2 + $0x98] sm:$0xff] %vm692_vm1, %v2678_v35  ;;  %v2979_v44 = vld [vmem:[%s3979_s3 + $0x1] ss:$0 sm:$0xff]  ;;  %v818_v51 = vmul.f32 %v2974_v42, %v781_v39  ;;  %v983_v55 = vld [vmem:[#allocation2 + $0x2] sm:$0xff]  ;;  %v819_v57 = vmul.f32 %v2974_v42, %v782_v46 }
  0x49   : > { %715 = vst.msk [vmem:[#allocation2 + $0xa8] sm:$0xff] %vm692_vm1, %v2678_v35  ;;  %716 = vst.msk [vmem:[#allocation2 + $0xb0] sm:$0xff] %vm692_vm1, %v2678_v35  ;;  %v919_v52 = vmul.f32 %v2979_v44, %v882_v43  ;;  %v2989_v56 = vld [vmem:[%s3979_s3 + $0x2] ss:$0 sm:$0xff]  ;;  %v920_v58 = vmul.f32 %v2979_v44, %v883_v47  ;;  %v984_v60 = vld [vmem:[#allocation2 + $0xa] sm:$0xff] }
  0x4a   : > { %717 = vst.msk [vmem:[#allocation2 + $0xb8] sm:$0x3] %vm695_vm2, %v2678_v35  ;;  %720 = vst.msk [vmem:[#allocation2 + $0xd0] sm:$0x3] %vm695_vm2, %v2678_v35  ;;  %v1020_v1 = vmul.f32 %v2989_v56, %v983_v55  ;;  %v1021_v5 = vmul.f32 %v2989_v56, %v984_v60  ;;  %v3004_v8 = vld [vmem:[%s3979_s3 + $0x4] ss:$0 sm:$0xff] }
  0x4b   : > { %2424 = vmatmul.mubr.msk.f32.gmra.mrb[6].mxu0 %vm338_vm0, %v304_v10  ;;  %718 = vst.msk [vmem:[#allocation2 + $0xc0] sm:$0xff] %vm692_vm1, %v2678_v35  ;;  %719 = vst.msk [vmem:[#allocation2 + $0xc8] sm:$0xff] %vm692_vm1, %v2678_v35  ;;  %v951_v0 = vadd.f32 %v919_v52, %v818_v51  ;;  %v952_v4 = vadd.f32 %v920_v58, %v819_v57  ;;  %v3009_v9 = vld [vmem:[%s3979_s3 + $0x5] ss:$0 sm:$0xff] }
  0x4c   : > { %2426 = vmatprep.mubr.msk.f32.mxu0 %vm338_vm0, %v305_v11  ;;  %721 = vst.msk [vmem:[#allocation2 + $0xd8] sm:$0xff] %vm692_vm1, %v2678_v35  ;;  %722 = vst.msk [vmem:[#allocation2 + $0xe0] sm:$0xff] %vm692_vm1, %v2678_v35 }
  0x4d   : > { %723 = vst.msk [vmem:[#allocation2 + $0xe8] sm:$0x3] %vm695_vm2, %v2678_v35  ;;  %726 = vst.msk [vmem:[#allocation2 + $0x100] sm:$0x3] %vm695_vm2, %v2678_v35 }
  0x4e   : > { %724 = vst.msk [vmem:[#allocation2 + $0xf0] sm:$0xff] %vm692_vm1, %v2678_v35  ;;  %725 = vst.msk [vmem:[#allocation2 + $0xf8] sm:$0xff] %vm692_vm1, %v2678_v35 }
  0x4f   : > { %2427 = vmatmul.mubr.msk.f32.gmra.mrb[8].mxu0 %vm338_vm0, %v306_v12  ;;  %727 = vst.msk [vmem:[#allocation2 + $0x108] sm:$0xff] %vm692_vm1, %v2678_v35  ;;  %728 = vst.msk [vmem:[#allocation2 + $0x110] sm:$0xff] %vm692_vm1, %v2678_v35  ;;  %v1052_v12 = vadd.f32 %v1020_v1, %v951_v0 }
  0x50   : > { %2429 = vmatprep.mubr.msk.f32.mxu0 %vm338_vm0, %v307_v13  ;;  %729 = vst.msk [vmem:[#allocation2 + $0x118] sm:$0x3] %vm695_vm2, %v2678_v35  ;;  %732 = vst.msk [vmem:[#allocation2 + $0x130] sm:$0x3] %vm695_vm2, %v2678_v35  ;;  %v3014_v13 = vld [vmem:[%s3979_s3 + $0x6] ss:$0 sm:$0xff] }
  0x51   : > { %730 = vst.msk [vmem:[#allocation2 + $0x120] sm:$0xff] %vm692_vm1, %v2678_v35  ;;  %731 = vst.msk [vmem:[#allocation2 + $0x128] sm:$0xff] %vm692_vm1, %v2678_v35 }
  0x52   : > { %733 = vst.msk [vmem:[#allocation2 + $0x138] sm:$0xff] %vm692_vm1, %v2678_v35  ;;  %734 = vst.msk [vmem:[#allocation2 + $0x140] sm:$0xff] %vm692_vm1, %v2678_v35 }
  0x53   : > { %2430 = vmatmul.mubr.msk.f32.gmra.mrb[10].mxu0 %vm338_vm0, %v308_v14  ;;  %735 = vst.msk [vmem:[#allocation2 + $0x148] sm:$0x3] %vm695_vm2, %v2678_v35  ;;  %738 = vst.msk [vmem:[#allocation2 + $0x160] sm:$0x3] %vm695_vm2, %v2678_v35 }
  0x54   : > { %2432 = vmatprep.mubr.msk.f32.mxu0 %vm338_vm0, %v309_v15  ;;  %736 = vst.msk [vmem:[#allocation2 + $0x150] sm:$0xff] %vm692_vm1, %v2678_v35  ;;  %737 = vst.msk [vmem:[#allocation2 + $0x158] sm:$0xff] %vm692_vm1, %v2678_v35 }
  0x55   : > { %739 = vst.msk [vmem:[#allocation2 + $0x168] sm:$0xff] %vm692_vm1, %v2678_v35  ;;  %740 = vst.msk [vmem:[#allocation2 + $0x170] sm:$0xff] %vm692_vm1, %v2678_v35 }
  0x56   : > { %741 = vst.msk [vmem:[#allocation2 + $0x178] sm:$0x3] %vm695_vm2, %v2678_v35  ;;  %744 = vst.msk [vmem:[#allocation2 + $0x190] sm:$0x3] %vm695_vm2, %v2678_v35 }
  0x57   : > { %2433 = vmatmul.mubr.msk.f32.gmra.mrb[12].mxu0 %vm338_vm0, %v310_v16  ;;  %742 = vst.msk [vmem:[#allocation2 + $0x180] sm:$0xff] %vm692_vm1, %v2678_v35  ;;  %743 = vst.msk [vmem:[#allocation2 + $0x188] sm:$0xff] %vm692_vm1, %v2678_v35 }
  0x58   : > { %2435 = vmatprep.mubr.msk.f32.mxu0 %vm338_vm0, %v311_v17  ;;  %745 = vst.msk [vmem:[#allocation2 + $0x198] sm:$0xff] %vm692_vm1, %v2678_v35  ;;  %746 = vst.msk [vmem:[#allocation2 + $0x1a0] sm:$0xff] %vm692_vm1, %v2678_v35 }
  0x59   : > { %747 = vst.msk [vmem:[#allocation2 + $0x1a8] sm:$0x3] %vm695_vm2, %v2678_v35 }
  0x5b   : > { %2436 = vmatmul.mubr.msk.f32.gmra.mrb[14].mxu0 %vm338_vm0, %v312_v18 }
  0x5c   : > { %2438 = vmatprep.mubr.msk.f32.mxu0 %vm338_vm0, %v313_v19 }
  0x5f   : > { %2439 = vmatmul.mubr.msk.f32.gmra.mrb[16].mxu0 %vm338_vm0, %v314_v20  ;;  %v1053_v20 = vadd.f32 %v1021_v5, %v952_v4 }
  0x60   : > { %2441 = vmatprep.mubr.msk.f32.mxu0 %vm338_vm0, %v315_v21 }
  0x63   : > { %2442 = vmatmul.mubr.msk.f32.gmra.mrb[18].mxu0 %vm338_vm0, %v316_v22 }
  0x64   : > { %2444 = vmatprep.mubr.msk.f32.mxu0 %vm338_vm0, %v317_v23 }
  0x67   : > { %2445 = vmatmul.mubr.msk.f32.gmra.mrb[20].mxu0 %vm338_vm0, %v318_v24 }
  0x68   : > { %2447 = vmatprep.mubr.msk.f32.mxu0 %vm338_vm0, %v319_v25 }
  0x6b   : > { %2448 = vmatmul.mubr.msk.f32.gmra.mrb[22].mxu0 %vm338_vm0, %v320_v26 }
  0x6c   : > { %2450 = vmatprep.mubr.msk.f32.mxu0 %vm338_vm0, %v321_v27 }
  0x6f   : > { %2451 = vmatmul.mubr.msk.f32.gmra.mrb[24].mxu0 %vm338_vm0, %v322_v28  ;;  %v3028_v28 = vld [vmem:[%s3979_s3 + $0x9] ss:$0 sm:$0xff] }
  0x70   : > { %2453 = vmatprep.mubr.msk.f32.mxu0 %vm338_vm0, %v323_v29 }
  0x73   : > { %2454 = vmatmul.mubr.msk.f32.gmra.mrb[26].mxu0 %vm338_vm0, %v324_v30 }
  0x74   : > { %2456 = vmatprep.mubr.msk.f32.mxu0 %vm338_vm0, %v325_v31 }
  0x77   : > { %2457 = vmatmul.mubr.msk.f32.gmra.mrb[28].mxu0 %vm338_vm0, %v326_v32 }
  0x78   : > { %2459 = vmatprep.mubr.msk.f32.mxu0 %vm338_vm0, %v327_v33 }
  0x7b   : > { %2460 = vmatmul.mubr.msk.f32.gmra.mrb[30].mxu0 %vm338_vm0, %v328_v34  ;;  %v3036_v34 = vld [vmem:[%s3979_s3 + $0x8] ss:$0 sm:$0xff] }
 0x112   : > { %v2416_v38 = vpop.f32.mrb[0].mxu0 }
 0x113   : > { %v507_v40 = vadd.f32 %v2416_v38, %v2968_v37  ;;  %v501_v41 = vpop.f32.mrb[1].mxu0 }
 0x114   : > { %v502_v45 = vadd.f32 %v2968_v37, %v501_v41 }
 0x115   : > { %v661_v48 = vmax.f32 %v507_v40, 0.0 }
 0x116   : > { %v660_v49 = vmax.f32 %v502_v45, 0.0  ;;  %v2419_v50 = vpop.f32.mrb[2].mxu0 }
 0x117   : > { %750 = vst.msk [vmem:[#allocation2 + $0x21] sm:$0xff] %vm692_vm1, %v661_v48  ;;  %v517_v53 = vadd.f32 %v2419_v50, %v2968_v37  ;;  %v511_v54 = vpop.f32.mrb[3].mxu0 }
 0x118   : > { %749 = vst.msk [vmem:[#allocation2 + $0x19] sm:$0xff] %vm692_vm1, %v660_v49  ;;  %v512_v59 = vadd.f32 %v2968_v37, %v511_v54  ;;  %v3053_v49 = vld [vmem:[%s3979_s3 + $0xa] ss:$0 sm:$0xff] }
 0x119   : > { %v663_v61 = vmax.f32 %v517_v53, 0.0 }
 0x11a   : > { %v662_v62 = vmax.f32 %v512_v59, 0.0  ;;  %v2422_v63 = vpop.f32.mrb[4].mxu0 }
 0x11b   : > { %752 = vst.msk [vmem:[#allocation2 + $0x39] sm:$0xff] %vm692_vm1, %v663_v61  ;;  %v527_v2 = vadd.f32 %v2422_v63, %v2968_v37  ;;  %v521_v3 = vpop.f32.mrb[5].mxu0 }
 0x11c   : > { %751 = vst.msk [vmem:[#allocation2 + $0x31] sm:$0xff] %vm692_vm1, %v662_v62  ;;  %v522_v6 = vadd.f32 %v2968_v37, %v521_v3 }
 0x11d   : > { %v665_v7 = vmax.f32 %v527_v2, 0.0 }
 0x11e   : > { %v664_v10 = vmax.f32 %v522_v6, 0.0  ;;  %v2425_v11 = vpop.f32.mrb[6].mxu0  ;;  %v1187_v14 = vld [vmem:[#allocation2 + $0x21] sm:$0xff] }
 0x11f   : > { %v3016_v15 = vld [vmem:[#allocation2 + $0x22] sm:$0xff]  ;;  %754 = vst.msk [vmem:[#allocation2 + $0x51] sm:$0xff] %vm692_vm1, %v665_v7  ;;  %v537_v16 = vadd.f32 %v2425_v11, %v2968_v37  ;;  %v531_v17 = vpop.f32.mrb[7].mxu0  ;;  %v1084_v18 = vld [vmem:[#allocation2 + $0x18] sm:$0xff]  ;;  %v1224_v25 = vmul.f32 %v3009_v9, %v1187_v14  ;;  %v922_v46 = vmul.f32 %v2979_v44, %v1187_v14 }
 0x120   : > { %v1186_v19 = vld [vmem:[#allocation2 + $0x19] sm:$0xff]  ;;  %753 = vst.msk [vmem:[#allocation2 + $0x49] sm:$0xff] %vm692_vm1, %v664_v10  ;;  %v532_v21 = vadd.f32 %v2968_v37, %v531_v17  ;;  %v1122_v22 = vmul.f32 %v3004_v8, %v1084_v18  ;;  %v1325_v30 = vmul.f32 %v3014_v13, %v3016_v15  ;;  %v820_v36 = vmul.f32 %v2974_v42, %v1084_v18 }
 0x121   : > { %v1287_v23 = vld [vmem:[#allocation2 + $0x1a] sm:$0xff]  ;;  %v667_v26 = vmax.f32 %v537_v16, 0.0  ;;  %v1223_v27 = vmul.f32 %v3009_v9, %v1186_v19  ;;  %v921_v38 = vmul.f32 %v2979_v44, %v1186_v19 }
 0x122   : > { %v1085_v24 = vld [vmem:[#allocation2 + $0x20] sm:$0xff]  ;;  %v666_v31 = vmax.f32 %v532_v21, 0.0  ;;  %v2428_v32 = vpop.f32.mrb[8].mxu0  ;;  %v1154_v33 = vadd.f32 %v1122_v22, %v1052_v12  ;;  %v1324_v41 = vmul.f32 %v3014_v13, %v1287_v23  ;;  %v1022_v52 = vmul.f32 %v2989_v56, %v1287_v23 }
 0x123   : > { %v1123_v29 = vmul.f32 %v3004_v8, %v1085_v24  ;;  %v3038_v35 = vld [vmem:[#allocation2 + $0x39] sm:$0xff]  ;;  %756 = vst.msk [vmem:[#allocation2 + $0x69] sm:$0xff] %vm692_vm1, %v667_v26  ;;  %v547_v39 = vadd.f32 %v2428_v32, %v2968_v37  ;;  %v541_v40 = vpop.f32.mrb[9].mxu0  ;;  %v3045_v43 = vld [vmem:[#allocation2 + $0x30] sm:$0xff]  ;;  %v821_v53 = vmul.f32 %v2974_v42, %v1085_v24  ;;  %v953_v0 = vadd.f32 %v921_v38, %v820_v36 }
 0x124   : > { %755 = vst.msk [vmem:[#allocation2 + $0x61] sm:$0xff] %vm692_vm1, %v666_v31  ;;  %v542_v47 = vadd.f32 %v2968_v37, %v541_v40  ;;  %v1255_v48 = vadd.f32 %v1223_v27, %v1154_v33  ;;  %v3055_v50 = vld [vmem:[#allocation2 + $0x38] sm:$0xff]  ;;  %v1427_v55 = vmul.f32 %v3036_v34, %v3045_v43  ;;  %v1529_v59 = vmul.f32 %v3028_v28, %v3038_v35  ;;  %v3092_v27 = vld [vmem:[%s3980_s4] ss:$0 sm:$0xff] }
 0x125   : > { %v1155_v45 = vadd.f32 %v1123_v29, %v1053_v20  ;;  %v3057_v51 = vld [vmem:[#allocation2 + $0x3a] sm:$0xff]  ;;  %v669_v54 = vmax.f32 %v547_v39, 0.0  ;;  %v3063_v57 = vld [vmem:[#allocation2 + $0x31] sm:$0xff]  ;;  %v1124_v1 = vmul.f32 %v3004_v8, %v3045_v43  ;;  %v1428_v5 = vmul.f32 %v3036_v34, %v3055_v50 }
 0x126   : > { %v668_v60 = vmax.f32 %v542_v47, 0.0  ;;  %v2431_v61 = vpop.f32.mrb[10].mxu0  ;;  %v1356_v62 = vadd.f32 %v1324_v41, %v1255_v48  ;;  %v3067_v63 = vld [vmem:[#allocation2 + $0x32] sm:$0xff]  ;;  %v1630_v6 = vmul.f32 %v3053_v49, %v3057_v51  ;;  %v1528_v11 = vmul.f32 %v3028_v28, %v3063_v57 }
 0x127   : > { %v1256_v58 = vadd.f32 %v1224_v25, %v1155_v45  ;;  %758 = vst.msk [vmem:[#allocation2 + $0x81] sm:$0xff] %vm692_vm1, %v669_v54  ;;  %v557_v2 = vadd.f32 %v2431_v61, %v2968_v37  ;;  %v551_v3 = vpop.f32.mrb[11].mxu0  ;;  %v1054_v12 = vadd.f32 %v1022_v52, %v953_v0  ;;  %v1629_v16 = vmul.f32 %v3053_v49, %v3067_v63  ;;  %v3085_v23 = vld [vmem:[#allocation2 + $0x48] sm:$0xff] }
 0x128   : > { %757 = vst.msk [vmem:[#allocation2 + $0x79] sm:$0xff] %vm692_vm1, %v668_v60  ;;  %v552_v7 = vadd.f32 %v2968_v37, %v551_v3  ;;  %v1459_v10 = vadd.f32 %v1427_v55, %v1356_v62  ;;  %v1225_v18 = vmul.f32 %v3009_v9, %v3063_v57  ;;  %v954_v24 = vadd.f32 %v922_v46, %v821_v53  ;;  %v3120_v3 = vld [vmem:[#allocation2 + $0x50] sm:$0xff] }
 0x129   : > { %v1357_v4 = vadd.f32 %v1325_v30, %v1256_v58  ;;  %v671_v14 = vmax.f32 %v557_v2, 0.0  ;;  %v1156_v22 = vadd.f32 %v1124_v1, %v1054_v12  ;;  %v3094_v30 = vld [vmem:[#allocation2 + $0x49] sm:$0xff]  ;;  %v1023_v31 = vmul.f32 %v2989_v56, %v3016_v15 }
 0x12a   : > { %v670_v19 = vmax.f32 %v552_v7, 0.0  ;;  %v2434_v20 = vpop.f32.mrb[12].mxu0  ;;  %v1560_v21 = vadd.f32 %v1528_v11, %v1459_v10  ;;  %v1125_v32 = vmul.f32 %v3004_v8, %v3055_v50  ;;  %v1326_v39 = vmul.f32 %v3014_v13, %v3067_v63 }
 0x12b   : > { %v1460_v17 = vadd.f32 %v1428_v5, %v1357_v4  ;;  %760 = vst.msk [vmem:[#allocation2 + $0x99] sm:$0xff] %vm692_vm1, %v671_v14  ;;  %v567_v25 = vadd.f32 %v2434_v20, %v2968_v37  ;;  %v561_v26 = vpop.f32.mrb[13].mxu0  ;;  %v1257_v38 = vadd.f32 %v1225_v18, %v1156_v22  ;;  %v1429_v45 = vmul.f32 %v3036_v34, %v3085_v23 }
 0x12c   : > { %759 = vst.msk [vmem:[#allocation2 + $0x91] sm:$0xff] %vm692_vm1, %v670_v19  ;;  %v562_v33 = vadd.f32 %v2968_v37, %v561_v26  ;;  %v1661_v36 = vadd.f32 %v1629_v16, %v1560_v21  ;;  %v1055_v46 = vadd.f32 %v1023_v31, %v954_v24  ;;  %v1530_v53 = vmul.f32 %v3028_v28, %v3094_v30  ;;  %v3127_v16 = vld [vmem:[#allocation2 + $0x51] sm:$0xff] }
 0x12d   : > { %v1561_v29 = vadd.f32 %v1529_v59, %v1460_v17  ;;  %v673_v40 = vmax.f32 %v567_v25, 0.0  ;;  %v1358_v52 = vadd.f32 %v1326_v39, %v1257_v38  ;;  %v3112_v59 = vld [vmem:[#allocation2 + $0x4a] sm:$0xff]  ;;  %v1226_v61 = vmul.f32 %v3009_v9, %v3038_v35  ;;  %v3129_v17 = vld [vmem:[#allocation2 + $0x52] sm:$0xff] }
 0x12e   : > { %v672_v47 = vmax.f32 %v562_v33, 0.0  ;;  %v2437_v15 = vpop.f32.mrb[14].mxu0  ;;  %v1700_v48 = vadd.f32 %v3092_v27, %v1661_v36  ;;  %v1157_v60 = vadd.f32 %v1125_v32, %v1055_v46  ;;  %v1327_v2 = vmul.f32 %v3014_v13, %v3057_v51 }
 0x12f   : > { %v1662_v41 = vadd.f32 %v1630_v6, %v1561_v29  ;;  %762 = vst.msk [vmem:[#allocation2 + $0xb1] sm:$0xff] %vm692_vm1, %v673_v40  ;;  %v577_v54 = vadd.f32 %v2437_v15, %v2968_v37  ;;  %v571_v55 = vpop.f32.mrb[15].mxu0  ;;  %v1461_v1 = vadd.f32 %v1429_v45, %v1358_v52  ;;  %v822_v7 = vmul.f32 %v2974_v42, %v3045_v43 }
 0x130   : > { %761 = vst.msk [vmem:[#allocation2 + $0xa9] sm:$0xff] %vm692_vm1, %v672_v47  ;;  %v572_v62 = vadd.f32 %v2968_v37, %v571_v55  ;;  %v1732_v0 = vmax.f32 %v1700_v48, 0.0  ;;  %v1258_v6 = vadd.f32 %v1226_v61, %v1157_v60  ;;  %v1631_v14 = vmul.f32 %v3053_v49, %v3112_v59  ;;  %v3161_v60 = vld [vmem:[#allocation2 + $0x60] sm:$0xff] }
 0x131   : > { %v1701_v58 = vadd.f32 %v3092_v27, %v1662_v41  ;;  %v675_v4 = vmax.f32 %v577_v54, 0.0  ;;  %v1562_v12 = vadd.f32 %v1530_v53, %v1461_v1  ;;  %v923_v18 = vmul.f32 %v2979_v44, %v3063_v57 }
 0x132   : > { %v674_v10 = vmax.f32 %v572_v62, 0.0  ;;  %v2440_v11 = vpop.f32.mrb[16].mxu0  ;;  %2464 = vmatprep.mubr.msk.f32.mxu1 %vm692_vm1, %v1732_v0  ;;  %v1359_v20 = vadd.f32 %v1327_v2, %v1258_v6  ;;  %v1430_v21 = vmul.f32 %v3036_v34, %v3120_v3  ;;  %v1024_v22 = vmul.f32 %v2989_v56, %v3067_v63 }
 0x133   : > { %v1733_v5 = vmax.f32 %v1701_v58, 0.0  ;;  %764 = vst.msk [vmem:[#allocation2 + $0xc9] sm:$0xff] %vm692_vm1, %v675_v4  ;;  %v587_v19 = vadd.f32 %v2440_v11, %v2968_v37  ;;  %v581_v43 = vpop.f32.mrb[17].mxu0  ;;  %v1663_v25 = vadd.f32 %v1631_v14, %v1562_v12  ;;  %v955_v57 = vadd.f32 %v923_v18, %v822_v7  ;;  %v3171_v4 = vld [vmem:[#allocation2 + $0x61] sm:$0xff] }
 0x134   : > { %763 = vst.msk [vmem:[#allocation2 + $0xc1] sm:$0xff] %vm692_vm1, %v674_v10  ;;  %v582_v24 = vadd.f32 %v2968_v37, %v581_v43  ;;  %v1126_v26 = vmul.f32 %v3004_v8, %v3085_v23  ;;  %v1462_v31 = vadd.f32 %v1430_v21, %v1359_v20  ;;  %v1531_v32 = vmul.f32 %v3028_v28, %v3127_v16  ;;  %v3176_v11 = vld [vmem:[#allocation2 + $0x62] sm:$0xff] }
 0x135   : > { %2465 = vmatmul.mubr.msk.f32.vlgmr.msra.gmra.mrb[0].mxu1 %vm692_vm1, %v1733_v5  ;;  %v677_v29 = vmax.f32 %v587_v19, 0.0  ;;  %v1632_v33 = vmul.f32 %v3053_v49, %v3129_v17  ;;  %v1702_v63 = vadd.f32 %v3092_v27, %v1663_v25  ;;  %v1056_v39 = vadd.f32 %v1024_v22, %v955_v57  ;;  %v3185_v25 = vld [vmem:[#allocation2 + $0x68] sm:$0xff] }
 0x136   : > { %v676_v36 = vmax.f32 %v582_v24, 0.0  ;;  %v2443_v38 = vpop.f32.mrb[18].mxu0  ;;  %v1227_v40 = vmul.f32 %v3009_v9, %v3094_v30  ;;  %v1563_v46 = vadd.f32 %v1531_v32, %v1462_v31  ;;  %v823_v47 = vmul.f32 %v2974_v42, %v3055_v50  ;;  %v3187_v57 = vld [vmem:[#allocation2 + $0x69] sm:$0xff] }
 0x137   : > { %766 = vst.msk [vmem:[#allocation2 + $0xe1] sm:$0xff] %vm692_vm1, %v677_v29  ;;  %v597_v41 = vadd.f32 %v2443_v38, %v2968_v37  ;;  %v591_v45 = vpop.f32.mrb[19].mxu0  ;;  %v924_v15 = vmul.f32 %v2979_v44, %v3038_v35  ;;  %v1734_v48 = vmax.f32 %v1702_v63, 0.0  ;;  %v1158_v53 = vadd.f32 %v1126_v26, %v1056_v39  ;;  %v3199_v63 = vld [vmem:[#allocation2 + $0x6a] sm:$0xff] }
 0x138   : > { %765 = vst.msk [vmem:[#allocation2 + $0xd9] sm:$0xff] %vm692_vm1, %v676_v36  ;;  %v592_v52 = vadd.f32 %v2968_v37, %v591_v45  ;;  %v1025_v54 = vmul.f32 %v2989_v56, %v3057_v51  ;;  %v1664_v58 = vadd.f32 %v1632_v33, %v1563_v46  ;;  %v1127_v50 = vmul.f32 %v3004_v8, %v3120_v3 }
 0x139   : > { %v679_v55 = vmax.f32 %v597_v41, 0.0  ;;  %v956_v61 = vadd.f32 %v924_v15, %v823_v47  ;;  %2467 = vmatprep.mubr.msk.f32.mxu1 %vm692_vm1, %v1734_v48  ;;  %v1259_v0 = vadd.f32 %v1227_v40, %v1158_v53  ;;  %v1328_v1 = vmul.f32 %v3014_v13, %v3112_v59 }
 0x13a   : > { %v678_v35 = vmax.f32 %v592_v52, 0.0  ;;  %v2446_v62 = vpop.f32.mrb[20].mxu0  ;;  %v1703_v51 = vadd.f32 %v3092_v27, %v1664_v58  ;;  %v1431_v10 = vmul.f32 %v3036_v34, %v3161_v60  ;;  %v1228_v14 = vmul.f32 %v3009_v9, %v3127_v16 }
 0x13b   : > { %768 = vst.msk [vmem:[#allocation2 + $0xf9] sm:$0xff] %vm692_vm1, %v679_v55  ;;  %v607_v2 = vadd.f32 %v2446_v62, %v2968_v37  ;;  %v601_v5 = vpop.f32.mrb[21].mxu0  ;;  %v1057_v6 = vadd.f32 %v1025_v54, %v956_v61  ;;  %v1360_v7 = vadd.f32 %v1328_v1, %v1259_v0  ;;  %v824_v20 = vmul.f32 %v2974_v42, %v3085_v23  ;;  %v3217_v61 = vld [vmem:[#allocation2 + $0x78] sm:$0xff] }
 0x13c   : > { %767 = vst.msk [vmem:[#allocation2 + $0xf1] sm:$0xff] %vm692_vm1, %v678_v35  ;;  %v602_v12 = vadd.f32 %v2968_v37, %v601_v5  ;;  %v1735_v18 = vmax.f32 %v1703_v51, 0.0  ;;  %v1532_v22 = vmul.f32 %v3028_v28, %v3171_v4  ;;  %v925_v29 = vmul.f32 %v2979_v44, %v3094_v30  ;;  %v3226_v5 = vld [vmem:[#allocation2 + $0x7a] sm:$0xff] }
 0x13d   : > { %v681_v19 = vmax.f32 %v607_v2, 0.0  ;;  %v1159_v43 = vadd.f32 %v1127_v50, %v1057_v6  ;;  %v1463_v21 = vadd.f32 %v1431_v10, %v1360_v7  ;;  %v1633_v23 = vmul.f32 %v3053_v49, %v3176_v11  ;;  %v3219_v50 = vld [vmem:[#allocation2 + $0x79] sm:$0xff] }
 0x13e   : > { %v680_v24 = vmax.f32 %v602_v12, 0.0  ;;  %v2449_v26 = vpop.f32.mrb[22].mxu0  ;;  %2468 = vmatmul.mubr.msk.f32.gmra.mrb[2].mxu1 %vm692_vm1, %v1735_v18  ;;  %v1329_v32 = vmul.f32 %v3014_v13, %v3129_v17  ;;  %v957_v30 = vadd.f32 %v925_v29, %v824_v20  ;;  %v1026_v39 = vmul.f32 %v2989_v56, %v3112_v59 }
 0x13f   : > { %770 = vst.msk [vmem:[#allocation2 + $0x111] sm:$0xff] %vm692_vm1, %v681_v19  ;;  %v1260_v31 = vadd.f32 %v1228_v14, %v1159_v43  ;;  %v617_v33 = vadd.f32 %v2449_v26, %v2968_v37  ;;  %v611_v36 = vpop.f32.mrb[23].mxu0  ;;  %v1564_v38 = vadd.f32 %v1532_v22, %v1463_v21  ;;  %v1128_v40 = vmul.f32 %v3004_v8, %v3161_v60 }
 0x140   : > { %769 = vst.msk [vmem:[#allocation2 + $0x109] sm:$0xff] %vm692_vm1, %v680_v24  ;;  %v1432_v45 = vmul.f32 %v3036_v34, %v3185_v25  ;;  %v1533_v46 = vmul.f32 %v3028_v28, %v3187_v57  ;;  %v1058_v48 = vadd.f32 %v1026_v39, %v957_v30  ;;  %v612_v52 = vadd.f32 %v2968_v37, %v611_v36  ;;  %v3256_v39 = vld [vmem:[#allocation2 + $0x82] sm:$0xff] }
 0x141   : > { %v1361_v41 = vadd.f32 %v1329_v32, %v1260_v31  ;;  %v683_v47 = vmax.f32 %v617_v33, 0.0  ;;  %v1665_v15 = vadd.f32 %v1633_v23, %v1564_v38  ;;  %v825_v53 = vmul.f32 %v2974_v42, %v3120_v3  ;;  %v3247_v23 = vld [vmem:[#allocation2 + $0x80] sm:$0xff] }
 0x142   : > { %v2452_v54 = vpop.f32.mrb[24].mxu0  ;;  %v1634_v55 = vmul.f32 %v3053_v49, %v3199_v63  ;;  %v1229_v58 = vmul.f32 %v3009_v9, %v3171_v4  ;;  %v926_v35 = vmul.f32 %v2979_v44, %v3127_v16  ;;  %v1160_v0 = vadd.f32 %v1128_v40, %v1058_v48  ;;  %v3249_v31 = vld [vmem:[#allocation2 + $0x81] sm:$0xff] }
 0x143   : > { %v1464_v59 = vadd.f32 %v1432_v45, %v1361_v41  ;;  %772 = vst.msk [vmem:[#allocation2 + $0x129] sm:$0xff] %vm692_vm1, %v683_v47  ;;  %v621_v62 = vpop.f32.mrb[25].mxu0  ;;  %v1704_v3 = vadd.f32 %v3092_v27, %v1665_v15  ;;  %v1330_v1 = vmul.f32 %v3014_v13, %v3176_v11  ;;  %v682_v51 = vmax.f32 %v612_v52, 0.0 }
 0x144   : > { %v958_v6 = vadd.f32 %v926_v35, %v825_v53  ;;  %v1027_v7 = vmul.f32 %v2989_v56, %v3129_v17  ;;  %v1129_v10 = vmul.f32 %v3004_v8, %v3185_v25  ;;  %v1261_v16 = vadd.f32 %v1229_v58, %v1160_v0  ;;  %v3281_v0 = vld [vmem:[#allocation2 + $0x91] sm:$0xff] }
 0x145   : > { %v1565_v2 = vadd.f32 %v1533_v46, %v1464_v59  ;;  %v1736_v12 = vmax.f32 %v1704_v3, 0.0  ;;  %v1433_v14 = vmul.f32 %v3036_v34, %v3217_v61  ;;  %v1534_v18 = vmul.f32 %v3028_v28, %v3219_v50  ;;  %771 = vst.msk [vmem:[#allocation2 + $0x121] sm:$0xff] %vm692_vm1, %v682_v51  ;;  %v3279_v3 = vld [vmem:[#allocation2 + $0x90] sm:$0xff] }
 0x146   : > { %v2455_v19 = vpop.f32.mrb[26].mxu0  ;;  %v1059_v20 = vadd.f32 %v1027_v7, %v958_v6  ;;  %v627_v21 = vadd.f32 %v2452_v54, %v2968_v37  ;;  %v826_v17 = vmul.f32 %v2974_v42, %v3161_v60  ;;  %v1362_v24 = vadd.f32 %v1330_v1, %v1261_v16 }
 0x147   : > { %v1666_v43 = vadd.f32 %v1634_v55, %v1565_v2  ;;  %v3240_v22 = vpop.f32.mrb[27].mxu0  ;;  %2470 = vmatprep.mubr.msk.f32.mxu1 %vm692_vm1, %v1736_v12  ;;  %v1635_v26 = vmul.f32 %v3053_v49, %v3226_v5  ;;  %v1230_v29 = vmul.f32 %v3009_v9, %v3187_v57  ;;  %v927_v32 = vmul.f32 %v2979_v44, %v3171_v4 }
 0x148   : > { %v1161_v33 = vadd.f32 %v1129_v10, %v1059_v20  ;;  %v1331_v36 = vmul.f32 %v3014_v13, %v3199_v63  ;;  %v685_v38 = vmax.f32 %v627_v21, 0.0  ;;  %v1465_v30 = vadd.f32 %v1433_v14, %v1362_v24  ;;  %v3289_v10 = vld [vmem:[#allocation2 + $0x92] sm:$0xff] }
 0x149   : > { %v1705_v60 = vadd.f32 %v3092_v27, %v1666_v43  ;;  %v959_v40 = vadd.f32 %v927_v32, %v826_v17  ;;  %v1028_v41 = vmul.f32 %v2989_v56, %v3176_v11  ;;  %v1130_v45 = vmul.f32 %v3004_v8, %v3217_v61 }
 0x14a   : > { %v3262_v46 = vpop.f32.mrb[28].mxu0  ;;  %v1262_v47 = vadd.f32 %v1230_v29, %v1161_v33  ;;  %v1434_v15 = vmul.f32 %v3036_v34, %v3247_v23  ;;  %v1535_v48 = vmul.f32 %v3028_v28, %v3249_v31  ;;  %774 = vst.msk [vmem:[#allocation2 + $0x141] sm:$0xff] %vm692_vm1, %v685_v38  ;;  %v1566_v53 = vadd.f32 %v1534_v18, %v1465_v30  ;;  %v3308_v33 = vld [vmem:[#allocation2 + $0x98] sm:$0xff] }
 0x14b   : > { %v1737_v4 = vmax.f32 %v1705_v60, 0.0  ;;  %v3269_v52 = vpop.f32.mrb[29].mxu0  ;;  %v1060_v54 = vadd.f32 %v1028_v41, %v959_v40  ;;  %v622_v11 = vadd.f32 %v2968_v37, %v621_v62  ;;  %v827_v59 = vmul.f32 %v2974_v42, %v3185_v25  ;;  %v3314_v41 = vld [vmem:[#allocation2 + $0x99] sm:$0xff] }
 0x14c   : > { %v1363_v55 = vadd.f32 %v1331_v36, %v1262_v47  ;;  %v1636_v58 = vmul.f32 %v3053_v49, %v3256_v39  ;;  %v1231_v35 = vmul.f32 %v3009_v9, %v3219_v50  ;;  %v928_v1 = vmul.f32 %v2979_v44, %v3187_v57 }
 0x14d   : > { %2471 = vmatmul.mubr.msk.f32.gmra.mrb[4].mxu1 %vm692_vm1, %v1737_v4  ;;  %v1667_v62 = vadd.f32 %v1635_v26, %v1566_v53  ;;  %v1162_v51 = vadd.f32 %v1130_v45, %v1060_v54  ;;  %v1332_v25 = vmul.f32 %v3014_v13, %v3226_v5  ;;  %v684_v2 = vmax.f32 %v622_v11, 0.0 }
 0x14e   : > { %v3287_v6 = vpop.f32.mrb[30].mxu0  ;;  %v1466_v7 = vadd.f32 %v1434_v15, %v1363_v55  ;;  %v960_v12 = vadd.f32 %v928_v1, %v827_v59  ;;  %v1029_v16 = vmul.f32 %v2989_v56, %v3199_v63  ;;  %v1131_v14 = vmul.f32 %v3004_v8, %v3247_v23 }
 0x14f   : > { %v3295_v18 = vpop.f32.mrb[31].mxu0  ;;  %v1706_v57 = vadd.f32 %v3092_v27, %v1667_v62  ;;  %v1263_v43 = vadd.f32 %v1231_v35, %v1162_v51  ;;  %v1435_v20 = vmul.f32 %v3036_v34, %v3279_v3  ;;  %v1536_v21 = vmul.f32 %v3028_v28, %v3281_v0  ;;  %773 = vst.msk [vmem:[#allocation2 + $0x139] sm:$0xff] %vm692_vm1, %v684_v2  ;;  %v3331_v35 = vld [vmem:[#allocation2 + $0x9a] sm:$0xff] }
 0x150   : > { %v1567_v17 = vadd.f32 %v1535_v48, %v1466_v7  ;;  %v1061_v24 = vadd.f32 %v1029_v16, %v960_v12  ;;  %v637_v63 = vadd.f32 %v2455_v19, %v2968_v37  ;;  %v828_v26 = vmul.f32 %v2974_v42, %v3217_v61  ;;  %v3339_v7 = vld [vmem:[#allocation2 + $0xa8] sm:$0xff] }
 0x151   : > { %v1738_v29 = vmax.f32 %v1706_v57, 0.0  ;;  %v1364_v32 = vadd.f32 %v1332_v25, %v1263_v43  ;;  %v1637_v60 = vmul.f32 %v3053_v49, %v3289_v10  ;;  %v929_v36 = vmul.f32 %v2979_v44, %v3219_v50  ;;  %v3341_v12 = vld [vmem:[#allocation2 + $0xa9] sm:$0xff] }
 0x152   : > { %v1668_v38 = vadd.f32 %v1636_v58, %v1567_v17  ;;  %v1163_v30 = vadd.f32 %v1131_v14, %v1061_v24  ;;  %v1232_v40 = vmul.f32 %v3009_v9, %v3249_v31  ;;  %v687_v19 = vmax.f32 %v637_v63, 0.0 }
 0x153   : > { %2473 = vmatprep.mubr.msk.f32.mxu1 %vm692_vm1, %v1738_v29  ;;  %v1467_v61 = vadd.f32 %v1435_v20, %v1364_v32  ;;  %v961_v45 = vadd.f32 %v929_v36, %v828_v26  ;;  %v1030_v4 = vmul.f32 %v2989_v56, %v3226_v5  ;;  %v1132_v47 = vmul.f32 %v3004_v8, %v3279_v3 }
 0x154   : > { %v1707_v50 = vadd.f32 %v3092_v27, %v1668_v38  ;;  %v1264_v15 = vadd.f32 %v1232_v40, %v1163_v30  ;;  %v1333_v48 = vmul.f32 %v3014_v13, %v3256_v39  ;;  %v1436_v53 = vmul.f32 %v3036_v34, %v3308_v33  ;;  %776 = vst.msk [vmem:[#allocation2 + $0x159] sm:$0xff] %vm692_vm1, %v687_v19  ;;  %v1602_v38 = vld [vmem:[#allocation2 + $0xaa] sm:$0xff] }
 0x155   : > { %v1568_v54 = vadd.f32 %v1536_v21, %v1467_v61  ;;  %v1537_v11 = vmul.f32 %v3028_v28, %v3314_v41  ;;  %v1062_v59 = vadd.f32 %v1030_v4, %v961_v45  ;;  %v632_v5 = vadd.f32 %v2968_v37, %v3240_v22  ;;  %v3364_v19 = vld [vmem:[#allocation2 + $0xb0] sm:$0xff] }
 0x156   : > { %v1739_v55 = vmax.f32 %v1707_v50, 0.0  ;;  %v1365_v58 = vadd.f32 %v1333_v48, %v1264_v15  ;;  %v829_v1 = vmul.f32 %v2974_v42, %v3247_v23  ;;  %v930_v62 = vmul.f32 %v2979_v44, %v3249_v31  ;;  %v3366_v61 = vld [vmem:[#allocation2 + $0xb1] sm:$0xff] }
 0x157   : > { %v1669_v51 = vadd.f32 %v1637_v60, %v1568_v54  ;;  %v1164_v25 = vadd.f32 %v1132_v47, %v1062_v59  ;;  %v1233_v2 = vmul.f32 %v3009_v9, %v3281_v0  ;;  %v686_v22 = vmax.f32 %v632_v5, 0.0  ;;  %v3376_v48 = vld [vmem:[#allocation2 + $0xb2] sm:$0xff] }
 0x158   : > { %2474 = vmatmul.mubr.msk.f32.gmra.mrb[6].mxu1 %vm692_vm1, %v1739_v55  ;;  %v1468_v16 = vadd.f32 %v1436_v53, %v1365_v58  ;;  %v962_v14 = vadd.f32 %v930_v62, %v829_v1  ;;  %v1031_v23 = vmul.f32 %v2989_v56, %v3256_v39  ;;  %v1133_v31 = vmul.f32 %v3004_v8, %v3308_v33 }
 0x159   : > { %v1708_v57 = vadd.f32 %v3092_v27, %v1669_v51  ;;  %v1638_v43 = vmul.f32 %v3053_v49, %v3331_v35  ;;  %v1265_v20 = vadd.f32 %v1233_v2, %v1164_v25  ;;  %v1334_v21 = vmul.f32 %v3014_v13, %v3289_v10  ;;  %775 = vst.msk [vmem:[#allocation2 + $0x151] sm:$0xff] %vm692_vm1, %v686_v22  ;;  %v3390_v25 = vld [vmem:[#allocation2 + $0xc0] sm:$0xff] }
 0x15a   : > { %v1569_v17 = vadd.f32 %v1537_v11, %v1468_v16  ;;  %v1437_v24 = vmul.f32 %v3036_v34, %v3339_v7  ;;  %v1538_v39 = vmul.f32 %v3028_v28, %v3341_v12  ;;  %v1063_v63 = vadd.f32 %v1031_v23, %v962_v14 }
 0x15b   : > { %v1740_v26 = vmax.f32 %v1708_v57, 0.0  ;;  %v1366_v29 = vadd.f32 %v1334_v21, %v1265_v20  ;;  %v647_v32 = vadd.f32 %v3262_v46, %v2968_v37  ;;  %v830_v60 = vmul.f32 %v2974_v42, %v3279_v3 }
 0x15c   : > { %v1670_v36 = vadd.f32 %v1638_v43, %v1569_v17  ;;  %v1165_v30 = vadd.f32 %v1133_v31, %v1063_v63  ;;  %v1234_v40 = vmul.f32 %v3009_v9, %v3314_v41  ;;  %v931_v45 = vmul.f32 %v2979_v44, %v3281_v0 }
 0x15d   : > { %2476 = vmatprep.mubr.msk.f32.mxu1 %vm692_vm1, %v1740_v26  ;;  %v1469_v4 = vadd.f32 %v1437_v24, %v1366_v29  ;;  %v1335_v46 = vmul.f32 %v3014_v13, %v3331_v35  ;;  %v689_v3 = vmax.f32 %v647_v32, 0.0  ;;  %v1032_v47 = vmul.f32 %v2989_v56, %v3289_v10 }
 0x15e   : > { %v1709_v50 = vadd.f32 %v3092_v27, %v1670_v36  ;;  %v1266_v15 = vadd.f32 %v1234_v40, %v1165_v30  ;;  %v963_v53 = vadd.f32 %v931_v45, %v830_v60  ;;  %v1134_v54 = vmul.f32 %v3004_v8, %v3339_v7  ;;  %v1604_v60 = vld [vmem:[#allocation2 + $0xc2] sm:$0xff] }
 0x15f   : > { %v1570_v0 = vadd.f32 %v1538_v39, %v1469_v4  ;;  %v1639_v11 = vmul.f32 %v3053_v49, %v1602_v38  ;;  %v1438_v59 = vmul.f32 %v3036_v34, %v3364_v19  ;;  %v1539_v5 = vmul.f32 %v3028_v28, %v3366_v61  ;;  %778 = vst.msk [vmem:[#allocation2 + $0x171] sm:$0xff] %vm692_vm1, %v689_v3  ;;  %v3414_v36 = vld [vmem:[#allocation2 + $0xc8] sm:$0xff] }
 0x160   : > { %v1741_v10 = vmax.f32 %v1709_v50, 0.0  ;;  %v1367_v55 = vadd.f32 %v1335_v46, %v1266_v15  ;;  %v1064_v58 = vadd.f32 %v1032_v47, %v963_v53  ;;  %v642_v1 = vadd.f32 %v2968_v37, %v3269_v52  ;;  %v3399_v52 = vld [vmem:[#allocation2 + $0xc1] sm:$0xff]  ;;  %v3423_v46 = vld [vmem:[#allocation2 + $0xc9] sm:$0xff] }
 0x161   : > { %v1671_v62 = vadd.f32 %v1639_v11, %v1570_v0  ;;  %v1640_v51 = vmul.f32 %v3053_v49, %v3376_v48  ;;  %v831_v2 = vmul.f32 %v2974_v42, %v3308_v33  ;;  %v932_v22 = vmul.f32 %v2979_v44, %v3314_v41 }
 0x162   : > { %2477 = vmatmul.mubr.msk.f32.gmra.mrb[8].mxu1 %vm692_vm1, %v1741_v10  ;;  %v1470_v16 = vadd.f32 %v1438_v59, %v1367_v55  ;;  %v1166_v14 = vadd.f32 %v1134_v54, %v1064_v58  ;;  %v1235_v23 = vmul.f32 %v3009_v9, %v3341_v12  ;;  %v688_v31 = vmax.f32 %v642_v1, 0.0 }
 0x163   : > { %v1710_v57 = vadd.f32 %v3092_v27, %v1671_v62  ;;  %v964_v43 = vadd.f32 %v932_v22, %v831_v2  ;;  %v1033_v20 = vmul.f32 %v2989_v56, %v3331_v35  ;;  %v1135_v33 = vmul.f32 %v3004_v8, %v3364_v19 }
 0x164   : > { %v1571_v41 = vadd.f32 %v1539_v5, %v1470_v16  ;;  %v1267_v21 = vadd.f32 %v1235_v23, %v1166_v14  ;;  %v1336_v17 = vmul.f32 %v3014_v13, %v1602_v38  ;;  %v1439_v24 = vmul.f32 %v3036_v34, %v3390_v25  ;;  %777 = vst.msk [vmem:[#allocation2 + $0x169] sm:$0xff] %vm692_vm1, %v688_v31  ;;  %v3446_v16 = vld [vmem:[#allocation2 + $0xd8] sm:$0xff] }
 0x165   : > { %v1742_v39 = vmax.f32 %v1710_v57, 0.0  ;;  %v1540_v63 = vmul.f32 %v3028_v28, %v3399_v52  ;;  %v1065_v26 = vadd.f32 %v1033_v20, %v964_v43  ;;  %v657_v35 = vadd.f32 %v3287_v6, %v2968_v37  ;;  %v1505_v43 = vld [vmem:[#allocation2 + $0xd9] sm:$0xff] }
 0x166   : > { %v1672_v29 = vadd.f32 %v1640_v51, %v1571_v41  ;;  %v1368_v32 = vadd.f32 %v1336_v17, %v1267_v21  ;;  %v832_v30 = vmul.f32 %v2974_v42, %v3339_v7  ;;  %v933_v40 = vmul.f32 %v2979_v44, %v3341_v12  ;;  %v1605_v51 = vld [vmem:[#allocation2 + $0xca] sm:$0xff] }
 0x167   : > { %2479 = vmatprep.mubr.msk.f32.mxu1 %vm692_vm1, %v1742_v39  ;;  %v1167_v45 = vadd.f32 %v1135_v33, %v1065_v26  ;;  %v1236_v4 = vmul.f32 %v3009_v9, %v3366_v61  ;;  %v691_v6 = vmax.f32 %v657_v35, 0.0  ;;  %v1034_v3 = vmul.f32 %v2989_v56, %v1602_v38 }
 0x168   : > { %v1711_v47 = vadd.f32 %v3092_v27, %v1672_v29  ;;  %v1471_v50 = vadd.f32 %v1439_v24, %v1368_v32  ;;  %v965_v15 = vadd.f32 %v933_v40, %v832_v30  ;;  %v1136_v7 = vmul.f32 %v3004_v8, %v3390_v25  ;;  %v1606_v24 = vld [vmem:[#allocation2 + $0xda] sm:$0xff] }
 0x169   : > { %v1641_v12 = vmul.f32 %v3053_v49, %v1604_v60  ;;  %v1268_v53 = vadd.f32 %v1236_v4, %v1167_v45  ;;  %v1337_v54 = vmul.f32 %v3014_v13, %v3376_v48  ;;  %v1440_v0 = vmul.f32 %v3036_v34, %v3414_v36  ;;  %780 = vst.msk [vmem:[#allocation2 + $0x189] sm:$0xff] %vm692_vm1, %v691_v6  ;;  %v3465_v30 = vld [vmem:[#allocation2 + $0xe0] sm:$0xff] }
 0x16a   : > { %v1743_v11 = vmax.f32 %v1711_v47, 0.0  ;;  %v1572_v38 = vadd.f32 %v1540_v63, %v1471_v50  ;;  %v1541_v59 = vmul.f32 %v3028_v28, %v3423_v46  ;;  %v1066_v5 = vadd.f32 %v1034_v3, %v965_v15  ;;  %v3468_v45 = vld [vmem:[#allocation2 + $0xe1] sm:$0xff] }
 0x16b   : > { %v1369_v10 = vadd.f32 %v1337_v54, %v1268_v53  ;;  %v652_v55 = vadd.f32 %v2968_v37, %v3295_v18  ;;  %v833_v58 = vmul.f32 %v2974_v42, %v3364_v19  ;;  %v934_v1 = vmul.f32 %v2979_v44, %v3366_v61  ;;  %v3476_v15 = vld [vmem:[#allocation2 + $0xe2] sm:$0xff] }
 0x16c   : > { %2480 = vmatmul.mubr.msk.f32.gmra.mrb[10].mxu1 %vm692_vm1, %v1743_v11  ;;  %v1673_v62 = vadd.f32 %v1641_v12, %v1572_v38  ;;  %v1168_v2 = vadd.f32 %v1136_v7, %v1066_v5  ;;  %v1237_v22 = vmul.f32 %v3009_v9, %v3399_v52  ;;  %v1035_v14 = vmul.f32 %v2989_v56, %v3376_v48  ;;  %v3484_v38 = vld [vmem:[#allocation2 + $0xf0] sm:$0xff] }
 0x16d   : > { %v1472_v37 = vadd.f32 %v1440_v0, %v1369_v10  ;;  %v690_v18 = vmax.f32 %v652_v55, 0.0  ;;  %v966_v23 = vadd.f32 %v934_v1, %v833_v58  ;;  %v1137_v19 = vmul.f32 %v3004_v8, %v3414_v36 }
 0x16e   : > { %v1712_v61 = vadd.f32 %v3092_v27, %v1673_v62  ;;  %v1269_v31 = vadd.f32 %v1237_v22, %v1168_v2  ;;  %v1338_v57 = vmul.f32 %v3014_v13, %v1604_v60  ;;  %v1642_v33 = vmul.f32 %v3053_v49, %v1605_v51 }
 0x16f   : > { %v1573_v20 = vadd.f32 %v1541_v59, %v1472_v37  ;;  %v1441_v41 = vmul.f32 %v3036_v34, %v3446_v16  ;;  %779 = vst.msk [vmem:[#allocation2 + $0x181] sm:$0xff] %vm692_vm1, %v690_v18  ;;  %v1067_v48 = vadd.f32 %v1035_v14, %v966_v23  ;;  %v834_v39 = vmul.f32 %v2974_v42, %v3390_v25  ;;  %v1507_v37 = vld [vmem:[#allocation2 + $0xf1] sm:$0xff] }
 0x170   : > { %v1744_v21 = vmax.f32 %v1712_v61, 0.0  ;;  %v1370_v17 = vadd.f32 %v1338_v57, %v1269_v31  ;;  %v935_v63 = vmul.f32 %v2979_v44, %v3399_v52  ;;  %v1542_v35 = vmul.f32 %v3028_v28, %v1505_v43  ;;  %v3499_v18 = vld [vmem:[#allocation2 + $0xf2] sm:$0xff] }
 0x171   : > { %v1674_v26 = vadd.f32 %v1642_v33, %v1573_v20  ;;  %v1169_v29 = vadd.f32 %v1137_v19, %v1067_v48  ;;  %v1238_v32 = vmul.f32 %v3009_v9, %v3423_v46  ;;  %v1036_v25 = vmul.f32 %v2989_v56, %v1604_v60  ;;  %v3511_v19 = vld [vmem:[%s3979_s3 + $0x1] ss:$0 sm:$0xff]  ;;  %v3516_v33 = vld [vmem:[#allocation2 + $0xf8] sm:$0xff] }
 0x172   : > { %2482 = vmatprep.mubr.msk.f32.mxu1 %vm692_vm1, %v1744_v21  ;;  %v1473_v40 = vadd.f32 %v1441_v41, %v1370_v17  ;;  %v967_v4 = vadd.f32 %v935_v63, %v834_v39  ;;  %v1138_v52 = vmul.f32 %v3004_v8, %v3446_v16  ;;  %v1643_v3 = vmul.f32 %v3053_v49, %v1606_v24  ;;  %v3521_v41 = vld [vmem:[%s3979_s3 + $0x2] ss:$0 sm:$0xff]  ;;  %v3524_v17 = vld [vmem:[#allocation2 + $0xf9] sm:$0xff] }
 0x173   : > { %v1713_v6 = vadd.f32 %v3092_v27, %v1674_v26  ;;  %v1270_v47 = vadd.f32 %v1238_v32, %v1169_v29  ;;  %v1339_v50 = vmul.f32 %v3014_v13, %v1605_v51  ;;  %v1442_v12 = vmul.f32 %v3036_v34, %v3465_v30 }
 0x174   : > { %v1574_v7 = vadd.f32 %v1542_v35, %v1473_v40  ;;  %v1068_v53 = vadd.f32 %v1036_v25, %v967_v4  ;;  %v835_v60 = vmul.f32 %v2974_v42, %v3414_v36  ;;  %v1543_v11 = vmul.f32 %v3028_v28, %v3468_v45  ;;  %v3539_v25 = vld [vmem:[#allocation2 + $0xfa] sm:$0xff] }
 0x175   : > { %v1745_v54 = vmax.f32 %v1713_v6, 0.0  ;;  %v1371_v0 = vadd.f32 %v1339_v50, %v1270_v47  ;;  %v936_v59 = vmul.f32 %v2979_v44, %v3423_v46  ;;  %v1644_v10 = vmul.f32 %v3053_v49, %v3476_v15  ;;  %v3548_v50 = vld [vmem:[%s3979_s3 + $0x5] ss:$0 sm:$0xff] }
 0x176   : > { %v1675_v5 = vadd.f32 %v1643_v3, %v1574_v7  ;;  %v1170_v55 = vadd.f32 %v1138_v52, %v1068_v53  ;;  %v1239_v58 = vmul.f32 %v3009_v9, %v1505_v43  ;;  %v1037_v1 = vmul.f32 %v2989_v56, %v1605_v51  ;;  %v3504_v56 = vld [vmem:[%s3979_s3] ss:$0 sm:$0xff]  ;;  %v3553_v53 = vld [vmem:[#allocation2 + $0x109] sm:$0xff] }
 0x177   : > { %2483 = vmatmul.mubr.msk.f32.gmra.mrb[12].mxu1 %vm692_vm1, %v1745_v54  ;;  %v1474_v42 = vadd.f32 %v1442_v12, %v1371_v0  ;;  %v968_v36 = vadd.f32 %v936_v59, %v835_v60  ;;  %v1139_v62 = vmul.f32 %v3004_v8, %v3465_v30  ;;  %v1340_v44 = vmul.f32 %v3014_v13, %v1606_v24  ;;  %v3551_v12 = vld [vmem:[#allocation2 + $0x108] sm:$0xff] }
 0x178   : > { %v1714_v2 = vadd.f32 %v3092_v27, %v1675_v5  ;;  %v1271_v22 = vadd.f32 %v1239_v58, %v1170_v55  ;;  %v1443_v46 = vmul.f32 %v3036_v34, %v3484_v38  ;;  %v836_v51 = vmul.f32 %v3504_v56, %v3446_v16  ;;  %v3570_v5 = vld [vmem:[%s3979_s3 + $0x6] ss:$0 sm:$0xff] }
 0x179   : > { %v1575_v14 = vadd.f32 %v1543_v11, %v1474_v42  ;;  %v1069_v23 = vadd.f32 %v1037_v1, %v968_v36  ;;  %v937_v61 = vmul.f32 %v3511_v19, %v1505_v43  ;;  %v1240_v20 = vmul.f32 %v3009_v9, %v3468_v45  ;;  %v3582_v1 = vld [vmem:[%s3979_s3 + $0x9] ss:$0 sm:$0xff] }
 0x17a   : > { %v1746_v31 = vmax.f32 %v1714_v2, 0.0  ;;  %v1372_v57 = vadd.f32 %v1340_v44, %v1271_v22  ;;  %v1038_v16 = vmul.f32 %v3521_v41, %v1606_v24  ;;  %v1140_v43 = vmul.f32 %v3004_v8, %v3484_v38  ;;  %v1610_v2 = vld [vmem:[#allocation2 + $0x10a] sm:$0xff] }
 0x17b   : > { %v1676_v48 = vadd.f32 %v1644_v10, %v1575_v14  ;;  %v1171_v21 = vadd.f32 %v1139_v62, %v1069_v23  ;;  %v969_v39 = vadd.f32 %v937_v61, %v836_v51  ;;  %v1544_v63 = vmul.f32 %v3028_v28, %v1507_v37  ;;  %v3586_v22 = vld [vmem:[#allocation2 + $0x110] sm:$0xff] }
 0x17c   : > { %2485 = vmatprep.mubr.msk.f32.mxu1 %vm692_vm1, %v1746_v31  ;;  %v1475_v9 = vadd.f32 %v1443_v46, %v1372_v57  ;;  %v1645_v26 = vmul.f32 %v3053_v49, %v3499_v18  ;;  %v1341_v35 = vmul.f32 %v3014_v13, %v3476_v15  ;;  %v1444_v32 = vmul.f32 %v3036_v34, %v3516_v33  ;;  %v3593_v61 = vld [vmem:[#allocation2 + $0x111] sm:$0xff] }
 0x17d   : > { %v1715_v24 = vadd.f32 %v3092_v27, %v1676_v48  ;;  %v1272_v29 = vadd.f32 %v1240_v20, %v1171_v21  ;;  %v1070_v40 = vadd.f32 %v1038_v16, %v969_v39  ;;  %v1545_v8 = vmul.f32 %v3028_v28, %v3524_v17  ;;  %v3595_v31 = vld [vmem:[#allocation2 + $0x112] sm:$0xff]  ;;  %v3611_v21 = vld [vmem:[%s3979_s3 + $0x8] ss:$0 sm:$0xff] }
 0x17e   : > { %v1576_v4 = vadd.f32 %v1544_v63, %v1475_v9  ;;  %v837_v52 = vmul.f32 %v3504_v56, %v3465_v30  ;;  %v938_v6 = vmul.f32 %v3511_v19, %v3468_v45  ;;  %v1241_v7 = vmul.f32 %v3548_v50, %v1507_v37  ;;  %v3560_v45 = vld [vmem:[%s3979_s3 + $0x4] ss:$0 sm:$0xff] }
 0x17f   : > { %v1747_v13 = vmax.f32 %v1715_v24, 0.0  ;;  %v1373_v3 = vadd.f32 %v1341_v35, %v1272_v29  ;;  %v1172_v47 = vadd.f32 %v1140_v43, %v1070_v40  ;;  %v1039_v30 = vmul.f32 %v3521_v41, %v3476_v15 }
 0x180   : > { %v1677_v28 = vadd.f32 %v1645_v26, %v1576_v4  ;;  %v970_v60 = vadd.f32 %v938_v6, %v837_v52  ;;  %v1141_v54 = vmul.f32 %v3560_v45, %v3516_v33  ;;  %v1646_v11 = vmul.f32 %v3053_v49, %v3539_v25 }
 0x181   : > { %2486 = vmatmul.mubr.msk.f32.gmra.mrb[14].mxu1 %vm692_vm1, %v1747_v13  ;;  %v1476_v0 = vadd.f32 %v1444_v32, %v1373_v3  ;;  %v1273_v59 = vadd.f32 %v1241_v7, %v1172_v47  ;;  %v1342_v15 = vmul.f32 %v3570_v5, %v3499_v18  ;;  %v1445_v55 = vmul.f32 %v3036_v34, %v3551_v12  ;;  %v3622_v32 = vld [vmem:[#allocation2 + $0x120] sm:$0xff] }
 0x182   : > { %v1716_v10 = vadd.f32 %v3092_v27, %v1677_v28  ;;  %v1071_v58 = vadd.f32 %v1039_v30, %v970_v60  ;;  %v838_v42 = vmul.f32 %v3504_v56, %v3484_v38  ;;  %v1546_v62 = vmul.f32 %v3582_v1, %v3553_v53 }
 0x183   : > { %v1577_v36 = vadd.f32 %v1545_v8, %v1476_v0  ;;  %v1374_v49 = vadd.f32 %v1342_v15, %v1273_v59  ;;  %v939_v44 = vmul.f32 %v3511_v19, %v1507_v37  ;;  %v1242_v38 = vmul.f32 %v3548_v50, %v3524_v17  ;;  %v3603_v37 = vld [vmem:[%s3979_s3 + $0xa] ss:$0 sm:$0xff]  ;;  %v1612_v0 = vld [vmem:[#allocation2 + $0x122] sm:$0xff] }
 0x184   : > { %v1748_v34 = vmax.f32 %v1716_v10, 0.0  ;;  %v1173_v46 = vadd.f32 %v1141_v54, %v1071_v58  ;;  %v1040_v14 = vmul.f32 %v3521_v41, %v3499_v18  ;;  %v1142_v20 = vmul.f32 %v3560_v45, %v3551_v12  ;;  %v1511_v54 = vld [vmem:[#allocation2 + $0x121] sm:$0xff] }
 0x185   : > { %v1678_v23 = vadd.f32 %v1646_v11, %v1577_v36  ;;  %v1477_v51 = vadd.f32 %v1445_v55, %v1374_v49  ;;  %v971_v57 = vadd.f32 %v939_v44, %v838_v42  ;;  %v1647_v16 = vmul.f32 %v3603_v37, %v1610_v2  ;;  %v3643_v55 = vld [vmem:[#allocation2 + $0x128] sm:$0xff] }
 0x186   : > { %2488 = vmatprep.mubr.msk.f32.mxu1 %vm692_vm1, %v1748_v34  ;;  %v1274_v18 = vadd.f32 %v1242_v38, %v1173_v46  ;;  %v1343_v48 = vmul.f32 %v3570_v5, %v3539_v25  ;;  %v1446_v39 = vmul.f32 %v3611_v21, %v3586_v22  ;;  %v839_v26 = vmul.f32 %v3504_v56, %v3516_v33  ;;  %v3646_v49 = vld [vmem:[#allocation2 + $0x129] sm:$0xff] }
 0x187   : > { %v1717_v43 = vadd.f32 %v3092_v27, %v1678_v23  ;;  %v1578_v9 = vadd.f32 %v1546_v62, %v1477_v51  ;;  %v1072_v63 = vadd.f32 %v1040_v14, %v971_v57  ;;  %v1547_v24 = vmul.f32 %v3582_v1, %v3593_v61 }
 0x188   : > { %v1375_v35 = vadd.f32 %v1343_v48, %v1274_v18  ;;  %v1648_v29 = vmul.f32 %v3603_v37, %v3595_v31  ;;  %v940_v40 = vmul.f32 %v3511_v19, %v3524_v17  ;;  %v1243_v6 = vmul.f32 %v3548_v50, %v3553_v53 }
 0x189   : > { %v1749_v4 = vmax.f32 %v1717_v43, 0.0  ;;  %v1679_v8 = vadd.f32 %v1647_v16, %v1578_v9  ;;  %v1174_v52 = vadd.f32 %v1142_v20, %v1072_v63  ;;  %v1041_v3 = vmul.f32 %v3521_v41, %v3539_v25  ;;  %v1613_v16 = vld [vmem:[#allocation2 + $0x12a] sm:$0xff] }
 0x18a   : > { %v1478_v13 = vadd.f32 %v1446_v39, %v1375_v35  ;;  %v972_v33 = vadd.f32 %v940_v40, %v839_v26  ;;  %v1143_v47 = vmul.f32 %v3560_v45, %v3586_v22  ;;  %v1344_v17 = vmul.f32 %v3570_v5, %v1610_v2  ;;  %v1411_v26 = vld [vmem:[#allocation2 + $0x138] sm:$0xff] }
 0x18b   : > { %2489 = vmatmul.mubr.msk.f32.gmra.mrb[16].mxu1 %vm692_vm1, %v1749_v4  ;;  %v1718_v7 = vadd.f32 %v3092_v27, %v1679_v8  ;;  %v1275_v28 = vadd.f32 %v1243_v6, %v1174_v52  ;;  %v1447_v60 = vmul.f32 %v3611_v21, %v3622_v32  ;;  %v840_v25 = vmul.f32 %v3504_v56, %v3551_v12 }
 0x18c   : > { %v1579_v30 = vadd.f32 %v1547_v24, %v1478_v13  ;;  %v1073_v11 = vadd.f32 %v1041_v3, %v972_v33  ;;  %v941_v59 = vmul.f32 %v3511_v19, %v3553_v53  ;;  %v1244_v27 = vmul.f32 %v3548_v50, %v3593_v61  ;;  %v1513_v24 = vld [vmem:[#allocation2 + $0x139] sm:$0xff] }
 0x18d   : > { %v1750_v15 = vmax.f32 %v1718_v7, 0.0  ;;  %v1376_v10 = vadd.f32 %v1344_v17, %v1275_v28  ;;  %v1042_v58 = vmul.f32 %v3521_v41, %v1610_v2  ;;  %v1144_v12 = vmul.f32 %v3560_v45, %v3622_v32  ;;  %v3658_v2 = vld [vmem:[%s3980_s4] ss:$0 sm:$0xff] }
 0x18e   : > { %v1680_v42 = vadd.f32 %v1648_v29, %v1579_v30  ;;  %v1175_v36 = vadd.f32 %v1143_v47, %v1073_v11  ;;  %v973_v62 = vadd.f32 %v941_v59, %v840_v25  ;;  %v1548_v44 = vmul.f32 %v3582_v1, %v1511_v54  ;;  %v1614_v28 = vld [vmem:[#allocation2 + $0x13a] sm:$0xff] }
 0x18f   : > { %2491 = vmatprep.mubr.msk.f32.mxu1 %vm692_vm1, %v1750_v15  ;;  %v1479_v53 = vadd.f32 %v1447_v60, %v1376_v10  ;;  %v1649_v34 = vmul.f32 %v3603_v37, %v1612_v0  ;;  %v1345_v46 = vmul.f32 %v3570_v5, %v3595_v31  ;;  %v1448_v23 = vmul.f32 %v3611_v21, %v3643_v55  ;;  %v3682_v17 = vld [vmem:[#allocation2 + $0x140] sm:$0xff] }
 0x190   : > { %v1719_v38 = vadd.f32 %v3658_v2, %v1680_v42  ;;  %v1276_v14 = vadd.f32 %v1244_v27, %v1175_v36  ;;  %v1074_v51 = vadd.f32 %v1042_v58, %v973_v62  ;;  %v1549_v20 = vmul.f32 %v3582_v1, %v3646_v49  ;;  %v1514_v27 = vld [vmem:[#allocation2 + $0x141] sm:$0xff] }
 0x191   : > { %v1580_v57 = vadd.f32 %v1548_v44, %v1479_v53  ;;  %v841_v18 = vmul.f32 %v3504_v56, %v3586_v22  ;;  %v942_v48 = vmul.f32 %v3511_v19, %v3593_v61  ;;  %v1245_v63 = vmul.f32 %v3548_v50, %v1511_v54 }
 0x192   : > { %v1751_v39 = vmax.f32 %v1719_v38, 0.0  ;;  %v1377_v43 = vadd.f32 %v1345_v46, %v1276_v14  ;;  %v1176_v9 = vadd.f32 %v1144_v12, %v1074_v51  ;;  %v1043_v40 = vmul.f32 %v3521_v41, %v3595_v31 }
 0x193   : > { %v1681_v35 = vadd.f32 %v1649_v34, %v1580_v57  ;;  %v974_v29 = vadd.f32 %v942_v48, %v841_v18  ;;  %v1145_v4 = vmul.f32 %v3560_v45, %v3643_v55  ;;  %v1650_v61 = vmul.f32 %v3603_v37, %v1613_v16 }
 0x194   : > { %2492 = vmatmul.mubr.msk.f32.gmra.mrb[18].mxu1 %vm692_vm1, %v1751_v39  ;;  %v1480_v22 = vadd.f32 %v1448_v23, %v1377_v43  ;;  %v1277_v8 = vadd.f32 %v1245_v63, %v1176_v9  ;;  %v1346_v52 = vmul.f32 %v3570_v5, %v1612_v0  ;;  %v1449_v13 = vmul.f32 %v3611_v21, %v1411_v26  ;;  %v3702_v23 = vld [vmem:[#allocation2 + $0x150] sm:$0xff] }
 0x195   : > { %v1720_v6 = vadd.f32 %v3658_v2, %v1681_v35  ;;  %v1075_v33 = vadd.f32 %v1043_v40, %v974_v29  ;;  %v842_v3 = vmul.f32 %v3504_v56, %v3622_v32  ;;  %v1550_v7 = vmul.f32 %v3582_v1, %v1513_v24  ;;  %v3688_v32 = vld [vmem:[#allocation2 + $0x142] sm:$0xff] }
 0x196   : > { %v1581_v31 = vadd.f32 %v1549_v20, %v1480_v22  ;;  %v1378_v47 = vadd.f32 %v1346_v52, %v1277_v8  ;;  %v943_v60 = vmul.f32 %v3511_v19, %v1511_v54  ;;  %v1246_v25 = vmul.f32 %v3548_v50, %v3646_v49  ;;  %v1616_v22 = vld [vmem:[#allocation2 + $0x152] sm:$0xff] }
 0x197   : > { %v1752_v30 = vmax.f32 %v1720_v6, 0.0  ;;  %v1177_v11 = vadd.f32 %v1145_v4, %v1075_v33  ;;  %v1044_v59 = vmul.f32 %v3521_v41, %v1612_v0  ;;  %v1146_v42 = vmul.f32 %v3560_v45, %v1411_v26  ;;  %v1515_v4 = vld [vmem:[#allocation2 + $0x151] sm:$0xff] }
 0x198   : > { %v1682_v15 = vadd.f32 %v1650_v61, %v1581_v31  ;;  %v1481_v10 = vadd.f32 %v1449_v13, %v1378_v47  ;;  %v975_v58 = vadd.f32 %v943_v60, %v842_v3  ;;  %v1651_v36 = vmul.f32 %v3603_v37, %v1614_v28  ;;  %v3718_v33 = vld [vmem:[#allocation2 + $0x158] sm:$0xff] }
 0x199   : > { %2494 = vmatprep.mubr.msk.f32.mxu1 %vm692_vm1, %v1752_v30  ;;  %v1278_v54 = vadd.f32 %v1246_v25, %v1177_v11  ;;  %v1347_v62 = vmul.f32 %v3570_v5, %v1613_v16  ;;  %v1450_v12 = vmul.f32 %v3611_v21, %v3682_v17  ;;  %v843_v34 = vmul.f32 %v3504_v56, %v3643_v55 }
 0x19a   : > { %v1721_v0 = vadd.f32 %v3658_v2, %v1682_v15  ;;  %v1582_v53 = vadd.f32 %v1550_v7, %v1481_v10  ;;  %v1076_v44 = vadd.f32 %v1044_v59, %v975_v58  ;;  %v1551_v38 = vmul.f32 %v3582_v1, %v1514_v27  ;;  %v3721_v7 = vld [vmem:[#allocation2 + $0x159] sm:$0xff] }
 0x19b   : > { %v1379_v46 = vadd.f32 %v1347_v62, %v1278_v54  ;;  %v1652_v14 = vmul.f32 %v3603_v37, %v3688_v32  ;;  %v944_v51 = vmul.f32 %v3511_v19, %v3646_v49  ;;  %v1247_v48 = vmul.f32 %v3548_v50, %v1513_v24 }
 0x19c   : > { %v1753_v57 = vmax.f32 %v1721_v0, 0.0  ;;  %v1683_v20 = vadd.f32 %v1651_v36, %v1582_v53  ;;  %v1178_v18 = vadd.f32 %v1146_v42, %v1076_v44  ;;  %v1045_v55 = vmul.f32 %v3521_v41, %v1613_v16  ;;  %v1617_v36 = vld [vmem:[#allocation2 + $0x15a] sm:$0xff] }
 0x19d   : > { %v1482_v39 = vadd.f32 %v1450_v12, %v1379_v46  ;;  %v976_v43 = vadd.f32 %v944_v51, %v843_v34  ;;  %v1147_v9 = vmul.f32 %v3560_v45, %v3682_v17  ;;  %v1348_v29 = vmul.f32 %v3570_v5, %v1614_v28  ;;  %v1415_v34 = vld [vmem:[#allocation2 + $0x168] sm:$0xff] }
 0x19e   : > { %2495 = vmatmul.mubr.msk.f32.gmra.mrb[20].mxu1 %vm692_vm1, %v1753_v57  ;;  %v1722_v63 = vadd.f32 %v3658_v2, %v1683_v20  ;;  %v1279_v35 = vadd.f32 %v1247_v48, %v1178_v18  ;;  %v1451_v49 = vmul.f32 %v3611_v21, %v3702_v23  ;;  %v844_v8 = vmul.f32 %v3504_v56, %v1411_v26 }
 0x19f   : > { %v1583_v40 = vadd.f32 %v1551_v38, %v1482_v39  ;;  %v1077_v61 = vadd.f32 %v1045_v55, %v976_v43  ;;  %v945_v16 = vmul.f32 %v3511_v19, %v1513_v24  ;;  %v1248_v13 = vmul.f32 %v3548_v50, %v1514_v27  ;;  %v1517_v38 = vld [vmem:[#allocation2 + $0x169] sm:$0xff] }
 0x1a0   : > { %v1754_v52 = vmax.f32 %v1722_v63, 0.0  ;;  %v1380_v6 = vadd.f32 %v1348_v29, %v1279_v35  ;;  %v1046_v3 = vmul.f32 %v3521_v41, %v1614_v28  ;;  %v1148_v30 = vmul.f32 %v3560_v45, %v3702_v23  ;;  %v1618_v35 = vld [vmem:[#allocation2 + $0x16a] sm:$0xff] }
 0x1a1   : > { %v1684_v31 = vadd.f32 %v1652_v14, %v1583_v40  ;;  %v1179_v47 = vadd.f32 %v1147_v9, %v1077_v61  ;;  %v977_v60 = vadd.f32 %v945_v16, %v844_v8  ;;  %v1552_v24 = vmul.f32 %v3582_v1, %v1515_v4  ;;  %v3751_v29 = vld [vmem:[#allocation2 + $0x170] sm:$0xff] }
 0x1a2   : > { %2497 = vmatprep.mubr.msk.f32.mxu1 %vm692_vm1, %v1754_v52  ;;  %v1483_v26 = vadd.f32 %v1451_v49, %v1380_v6  ;;  %v1653_v11 = vmul.f32 %v3603_v37, %v1616_v22  ;;  %v1349_v25 = vmul.f32 %v3570_v5, %v3688_v32  ;;  %v1452_v15 = vmul.f32 %v3611_v21, %v3718_v33 }
 0x1a3   : > { %v1723_v28 = vadd.f32 %v3658_v2, %v1684_v31  ;;  %v1280_v59 = vadd.f32 %v1248_v13, %v1179_v47  ;;  %v1078_v10 = vadd.f32 %v1046_v3, %v977_v60  ;;  %v1553_v42 = vmul.f32 %v3582_v1, %v3721_v7  ;;  %v1518_v13 = vld [vmem:[#allocation2 + $0x171] sm:$0xff] }
 0x1a4   : > { %v1584_v58 = vadd.f32 %v1552_v24, %v1483_v26  ;;  %v845_v54 = vmul.f32 %v3504_v56, %v3682_v17  ;;  %v946_v62 = vmul.f32 %v3511_v19, %v1514_v27  ;;  %v1249_v44 = vmul.f32 %v3548_v50, %v1515_v4 }
 0x1a5   : > { %v1755_v12 = vmax.f32 %v1723_v28, 0.0  ;;  %v1381_v0 = vadd.f32 %v1349_v25, %v1280_v59  ;;  %v1180_v53 = vadd.f32 %v1148_v30, %v1078_v10  ;;  %v1047_v51 = vmul.f32 %v3521_v41, %v3688_v32 }
 0x1a6   : > { %v1685_v46 = vadd.f32 %v1653_v11, %v1584_v58  ;;  %v978_v14 = vadd.f32 %v946_v62, %v845_v54  ;;  %v1149_v57 = vmul.f32 %v3560_v45, %v3718_v33  ;;  %v1654_v27 = vmul.f32 %v3603_v37, %v1617_v36 }
 0x1a7   : > { %2498 = vmatmul.mubr.msk.f32.gmra.mrb[22].mxu1 %vm692_vm1, %v1755_v12  ;;  %v1484_v17 = vadd.f32 %v1452_v15, %v1381_v0  ;;  %v1281_v20 = vadd.f32 %v1249_v44, %v1180_v53  ;;  %v1350_v18 = vmul.f32 %v3570_v5, %v1616_v22  ;;  %v1453_v39 = vmul.f32 %v3611_v21, %v1415_v34  ;;  %v1417_v15 = vld [vmem:[#allocation2 + $0x180] sm:$0xff] }
 0x1a8   : > { %v1724_v48 = vadd.f32 %v3658_v2, %v1685_v46  ;;  %v1079_v43 = vadd.f32 %v1047_v51, %v978_v14  ;;  %v846_v55 = vmul.f32 %v3504_v56, %v3702_v23  ;;  %v1554_v63 = vmul.f32 %v3582_v1, %v1517_v38  ;;  %v3757_v23 = vld [vmem:[#allocation2 + $0x172] sm:$0xff] }
 0x1a9   : > { %v1585_v32 = vadd.f32 %v1553_v42, %v1484_v17  ;;  %v1382_v9 = vadd.f32 %v1350_v18, %v1281_v20  ;;  %v947_v49 = vmul.f32 %v3511_v19, %v1515_v4  ;;  %v1250_v8 = vmul.f32 %v3548_v50, %v3721_v7  ;;  %v1620_v17 = vld [vmem:[#allocation2 + $0x182] sm:$0xff] }
 0x1aa   : > { %v1756_v40 = vmax.f32 %v1724_v48, 0.0  ;;  %v1181_v61 = vadd.f32 %v1149_v57, %v1079_v43  ;;  %v1048_v16 = vmul.f32 %v3521_v41, %v1616_v22  ;;  %v1150_v31 = vmul.f32 %v3560_v45, %v1415_v34  ;;  %v1519_v57 = vld [vmem:[#allocation2 + $0x181] sm:$0xff] }
 0x1ab   : > { %v1686_v52 = vadd.f32 %v1654_v27, %v1585_v32  ;;  %v1485_v6 = vadd.f32 %v1453_v39, %v1382_v9  ;;  %v979_v3 = vadd.f32 %v947_v49, %v846_v55  ;;  %v1655_v47 = vmul.f32 %v3603_v37, %v1618_v35  ;;  %v1418_v43 = vld [vmem:[#allocation2 + $0x188] sm:$0xff] }
 0x1ac   : > { %2500 = vmatprep.mubr.msk.f32.mxu1 %vm692_vm1, %v1756_v40  ;;  %v1282_v4 = vadd.f32 %v1250_v8, %v1181_v61  ;;  %v1351_v60 = vmul.f32 %v3570_v5, %v1617_v36  ;;  %v1454_v30 = vmul.f32 %v3611_v21, %v3751_v29  ;;  %v847_v11 = vmul.f32 %v3504_v56, %v3718_v33 }
 0x1ad   : > { %v1725_v22 = vadd.f32 %v3658_v2, %v1686_v52  ;;  %v1586_v26 = vadd.f32 %v1554_v63, %v1485_v6  ;;  %v1080_v24 = vadd.f32 %v1048_v16, %v979_v3  ;;  %v1555_v28 = vmul.f32 %v3582_v1, %v1518_v13  ;;  %v1520_v63 = vld [vmem:[#allocation2 + $0x189] sm:$0xff] }
 0x1ae   : > { %v1383_v25 = vadd.f32 %v1351_v60, %v1282_v4  ;;  %v1656_v59 = vmul.f32 %v3603_v37, %v3757_v23  ;;  %v948_v10 = vmul.f32 %v3511_v19, %v3721_v7  ;;  %v1251_v62 = vmul.f32 %v3548_v50, %v1517_v38 }
 0x1af   : > { %v1757_v58 = vmax.f32 %v1725_v22, 0.0  ;;  %v1687_v42 = vadd.f32 %v1655_v47, %v1586_v26  ;;  %v1182_v54 = vadd.f32 %v1150_v31, %v1080_v24  ;;  %v1049_v53 = vmul.f32 %v3521_v41, %v1617_v36  ;;  %v1419_v47 = vld [vmem:[#allocation2 + $0x198] sm:$0xff] }
 0x1b0   : > { %v1486_v12 = vadd.f32 %v1454_v30, %v1383_v25  ;;  %v980_v0 = vadd.f32 %v948_v10, %v847_v11  ;;  %v1151_v33 = vmul.f32 %v3560_v45, %v3751_v29  ;;  %v1352_v14 = vmul.f32 %v3570_v5, %v1618_v35  ;;  %v1621_v25 = vld [vmem:[#allocation2 + $0x18a] sm:$0xff] }
 0x1b1   : > { %2501 = vmatmul.mubr.msk.f32.gmra.mrb[24].mxu1 %vm692_vm1, %v1757_v58  ;;  %v1726_v44 = vadd.f32 %v3658_v2, %v1687_v42  ;;  %v1283_v46 = vadd.f32 %v1251_v62, %v1182_v54  ;;  %v1455_v7 = vmul.f32 %v3611_v21, %v1417_v15  ;;  %v848_v20 = vmul.f32 %v3504_v56, %v1415_v34  ;;  %v1622_v42 = vld [vmem:[#allocation2 + $0x19a] sm:$0xff] }
 0x1b2   : > { %v1587_v51 = vadd.f32 %v1555_v28, %v1486_v12  ;;  %v1081_v27 = vadd.f32 %v1049_v53, %v980_v0  ;;  %v949_v36 = vmul.f32 %v3511_v19, %v1517_v38  ;;  %v1252_v39 = vmul.f32 %v3548_v50, %v1518_v13  ;;  %v1521_v28 = vld [vmem:[#allocation2 + $0x199] sm:$0xff] }
 0x1b3   : > { %v1758_v18 = vmax.f32 %v1726_v44, 0.0  ;;  %v1384_v48 = vadd.f32 %v1352_v14, %v1283_v46  ;;  %v1050_v55 = vmul.f32 %v3521_v41, %v1618_v35  ;;  %v1152_v40 = vmul.f32 %v3560_v45, %v1417_v15 }
 0x1b4   : > { %v1688_v32 = vadd.f32 %v1656_v59, %v1587_v51  ;;  %v1183_v9 = vadd.f32 %v1151_v33, %v1081_v27  ;;  %v981_v49 = vadd.f32 %v949_v36, %v848_v20  ;;  %v1556_v34 = vmul.f32 %v3582_v1, %v1519_v57  ;;  %v1623_v36 = vld [vmem:[#allocation2 + $0x1a2] sm:$0xff] }
 0x1b5   : > { %2503 = vmatprep.mubr.msk.f32.mxu1 %vm692_vm1, %v1758_v18  ;;  %v1487_v61 = vadd.f32 %v1455_v7, %v1384_v48  ;;  %v1657_v38 = vmul.f32 %v3603_v37, %v1620_v17  ;;  %v1353_v8 = vmul.f32 %v3570_v5, %v3757_v23  ;;  %v1456_v35 = vmul.f32 %v3611_v21, %v1418_v43  ;;  %v1522_v7 = vld [vmem:[#allocation2 + $0x1a1] sm:$0xff] }
 0x1b6   : > { %v1727_v16 = vadd.f32 %v3658_v2, %v1688_v32  ;;  %v1284_v52 = vadd.f32 %v1252_v39, %v1183_v9  ;;  %v1082_v6 = vadd.f32 %v1050_v55, %v981_v49  ;;  %v1557_v31 = vmul.f32 %v3582_v1, %v1520_v63 }
 0x1b7   : > { %v1588_v3 = vadd.f32 %v1556_v34, %v1487_v61  ;;  %v849_v4 = vmul.f32 %v3504_v56, %v3751_v29  ;;  %v950_v60 = vmul.f32 %v3511_v19, %v1518_v13  ;;  %v1253_v24 = vmul.f32 %v3548_v50, %v1519_v57 }
 0x1b8   : > { %v1759_v30 = vmax.f32 %v1727_v16, 0.0  ;;  %v1385_v22 = vadd.f32 %v1353_v8, %v1284_v52  ;;  %v1184_v26 = vadd.f32 %v1152_v40, %v1082_v6  ;;  %v1051_v15 = vmul.f32 %v3521_v41, %v3757_v23  ;;  %v1420_v23 = vld [vmem:[#allocation2 + $0x1a0] sm:$0xff] }
 0x1b9   : > { %v1689_v11 = vadd.f32 %v1657_v38, %v1588_v3  ;;  %v982_v59 = vadd.f32 %v950_v60, %v849_v4  ;;  %v1153_v10 = vmul.f32 %v3560_v45, %v1418_v43  ;;  %v1354_v19 = vmul.f32 %v3570_v5, %v1620_v17 }
 0x1ba   : > { %2504 = vmatmul.mubr.msk.f32.gmra.mrb[26].mxu1 %vm692_vm1, %v1759_v30  ;;  %v1488_v58 = vadd.f32 %v1456_v35, %v1385_v22  ;;  %v1285_v56 = vadd.f32 %v1253_v24, %v1184_v26  ;;  %v1457_v29 = vmul.f32 %v3611_v21, %v1419_v47  ;;  %v1658_v12 = vmul.f32 %v3603_v37, %v1621_v25 }
 0x1bb   : > { %v1728_v13 = vadd.f32 %v3658_v2, %v1689_v11  ;;  %v1083_v54 = vadd.f32 %v1051_v15, %v982_v59  ;;  %v1558_v41 = vmul.f32 %v3582_v1, %v1521_v28  ;;  %v1254_v33 = vmul.f32 %v3548_v50, %v1520_v63 }
 0x1bc   : > { %v1589_v62 = vadd.f32 %v1557_v31, %v1488_v58  ;;  %v1386_v0 = vadd.f32 %v1354_v19, %v1285_v56  ;;  %v1659_v14 = vmul.f32 %v3603_v37, %v1622_v42  ;;  %v1355_v57 = vmul.f32 %v3570_v5, %v1621_v25 }
 0x1bd   : > { %v1760_v45 = vmax.f32 %v1728_v13, 0.0  ;;  %v1185_v53 = vadd.f32 %v1153_v10, %v1083_v54  ;;  %v1458_v17 = vmul.f32 %v3611_v21, %v1420_v23  ;;  %v1559_v48 = vmul.f32 %v3582_v1, %v1522_v7  ;;  %v3823_v1 = vld [vmem:[%s3982_s6] ss:$0 sm:$0xff] }
 0x1be   : > { %v1690_v44 = vadd.f32 %v1658_v12, %v1589_v62  ;;  %v1489_v46 = vadd.f32 %v1457_v29, %v1386_v0  ;;  %v1660_v55 = vmul.f32 %v3603_v37, %v1623_v36 }
 0x1bf   : > { %2506 = vmatprep.mubr.msk.f32.mxu1 %vm692_vm1, %v1760_v45  ;;  %v1286_v51 = vadd.f32 %v1254_v33, %v1185_v53 }
 0x1c0   : > { %v1729_v27 = vadd.f32 %v3658_v2, %v1690_v44  ;;  %v1590_v20 = vadd.f32 %v1558_v41, %v1489_v46 }
 0x1c1   : > { %v1387_v18 = vadd.f32 %v1355_v57, %v1286_v51 }
 0x1c2   : > { %v1761_v50 = vmax.f32 %v1729_v27, 0.0  ;;  %v1691_v39 = vadd.f32 %v1659_v14, %v1590_v20 }
 0x1c3   : > { %v1490_v43 = vadd.f32 %v1458_v17, %v1387_v18 }
 0x1c4   : > { %2507 = vmatmul.mubr.msk.f32.gmra.mrb[28].mxu1 %vm692_vm1, %v1761_v50  ;;  %v1730_v32 = vadd.f32 %v3658_v2, %v1691_v39 }
 0x1c5   : > { %v1591_v5 = vadd.f32 %v1559_v48, %v1490_v43 }
 0x1c6   : > { %v1762_v9 = vmax.f32 %v1730_v32, 0.0 }
 0x1c7   : > { %v1692_v21 = vadd.f32 %v1660_v55, %v1591_v5 }
 0x1c8   : > { %2509 = vmatprep.mubr.msk.f32.mxu1 %vm692_vm1, %v1762_v9 }
 0x1c9   : > { %v1731_v63 = vadd.f32 %v3658_v2, %v1692_v21 }
 0x1cb   : > { %v1763_v49 = vmax.f32 %v1731_v63, 0.0 }
 0x1cd   : > { %2510 = vmatmul.mubr.msk.f32.gmra.mrb[30].mxu1 %vm692_vm1, %v1763_v49 }
 0x208   : > { %v2466_v37 = vpop.f32.mrb[0].mxu1 }
 0x209   : > { %v1940_v40 = vadd.f32 %v2466_v37, %v3823_v1  ;;  %v1934_v61 = vpop.f32.mrb[1].mxu1 }
 0x20a   : > { %v1935_v34 = vadd.f32 %v3823_v1, %v1934_v61 }
 0x20b   : > { %v2094_v38 = vmax.f32 %v1940_v40, 0.0 }
 0x20c   : > { %v2093_v8 = vmax.f32 %v1935_v34, 0.0 }
 0x20d   : > { %2127 = vst.msk [vmem:[%s3829_s23 + $0x8] sm:$0xff] %vm2125_vm3, %v2094_v38 }
 0x20e   : > { %2126 = vst.msk [vmem:[%s3829_s23] sm:$0xff] %vm2125_vm3, %v2093_v8 }
 0x211   : > { %v2469_v2 = vpop.f32.mrb[2].mxu1 }
 0x212   : > { %v1950_v16 = vadd.f32 %v2469_v2, %v3823_v1  ;;  %v1944_v52 = vpop.f32.mrb[3].mxu1 }
 0x213   : > { %v1945_v35 = vadd.f32 %v3823_v1, %v1944_v52 }
 0x214   : > { %v2096_v6 = vmax.f32 %v1950_v16, 0.0 }
 0x215   : > { %v2095_v3 = vmax.f32 %v1945_v35, 0.0 }
 0x216   : > { %2129 = vst.msk [vmem:[%s3829_s23 + $0x18] sm:$0xff] %vm2125_vm3, %v2096_v6 }
 0x217   : > { %2128 = vst.msk [vmem:[%s3829_s23 + $0x10] sm:$0xff] %vm2125_vm3, %v2095_v3 }
 0x220   : > { %v2472_v31 = vpop.f32.mrb[4].mxu1 }
 0x221   : > { %v1960_v47 = vadd.f32 %v2472_v31, %v3823_v1  ;;  %v1954_v4 = vpop.f32.mrb[5].mxu1 }
 0x222   : > { %v1955_v60 = vadd.f32 %v3823_v1, %v1954_v4 }
 0x223   : > { %v2098_v30 = vmax.f32 %v1960_v47, 0.0 }
 0x224   : > { %v2097_v22 = vmax.f32 %v1955_v60, 0.0 }
 0x225   : > { %2131 = vst.msk [vmem:[%s3829_s23 + $0x28] sm:$0xff] %vm2125_vm3, %v2098_v30 }
 0x226   : > { %2130 = vst.msk [vmem:[%s3829_s23 + $0x20] sm:$0xff] %vm2125_vm3, %v2097_v22 }
 0x22b   : > { %v2475_v26 = vpop.f32.mrb[6].mxu1 }
 0x22c   : > { %v1970_v24 = vadd.f32 %v2475_v26, %v3823_v1  ;;  %v1964_v11 = vpop.f32.mrb[7].mxu1 }
 0x22d   : > { %v1965_v25 = vadd.f32 %v3823_v1, %v1964_v11 }
 0x22e   : > { %v2100_v28 = vmax.f32 %v1970_v24, 0.0 }
 0x22f   : > { %v2099_v59 = vmax.f32 %v1965_v25, 0.0 }
 0x230   : > { %2133 = vst.msk [vmem:[%s3829_s23 + $0x38] sm:$0xff] %vm2125_vm3, %v2100_v28 }
 0x231   : > { %2132 = vst.msk [vmem:[%s3829_s23 + $0x30] sm:$0xff] %vm2125_vm3, %v2099_v59 }
 0x235   : > { %v2478_v15 = vpop.f32.mrb[8].mxu1 }
 0x236   : > { %v1980_v10 = vadd.f32 %v2478_v15, %v3823_v1  ;;  %v1974_v58 = vpop.f32.mrb[9].mxu1 }
 0x237   : > { %v1975_v56 = vadd.f32 %v3823_v1, %v1974_v58 }
 0x238   : > { %v2102_v19 = vmax.f32 %v1980_v10, 0.0 }
 0x239   : > { %v2101_v29 = vmax.f32 %v1975_v56, 0.0 }
 0x23a   : > { %2135 = vst.msk [vmem:[%s3829_s23 + $0x48] sm:$0xff] %vm2125_vm3, %v2102_v19 }
 0x23b   : > { %2134 = vst.msk [vmem:[%s3829_s23 + $0x40] sm:$0xff] %vm2125_vm3, %v2101_v29 }
 0x23f   : > { %v2481_v13 = vpop.f32.mrb[10].mxu1 }
 0x240   : > { %v1990_v42 = vadd.f32 %v2481_v13, %v3823_v1  ;;  %v1984_v54 = vpop.f32.mrb[11].mxu1 }
 0x241   : > { %v1985_v62 = vadd.f32 %v3823_v1, %v1984_v54 }
 0x242   : > { %v2104_v12 = vmax.f32 %v1990_v42, 0.0 }
 0x243   : > { %v2103_v0 = vmax.f32 %v1985_v62, 0.0 }
 0x244   : > { %2137 = vst.msk [vmem:[%s3829_s23 + $0x58] sm:$0xff] %vm2125_vm3, %v2104_v12 }
 0x245   : > { %2136 = vst.msk [vmem:[%s3829_s23 + $0x50] sm:$0xff] %vm2125_vm3, %v2103_v0 }
 0x24a   : > { %v2484_v41 = vpop.f32.mrb[12].mxu1 }
 0x24b   : > { %v2000_v23 = vadd.f32 %v2484_v41, %v3823_v1  ;;  %v1994_v45 = vpop.f32.mrb[13].mxu1 }
 0x24c   : > { %v1995_v53 = vadd.f32 %v3823_v1, %v1994_v45 }
 0x24d   : > { %v2106_v33 = vmax.f32 %v2000_v23, 0.0 }
 0x24e   : > { %v2105_v44 = vmax.f32 %v1995_v53, 0.0 }
 0x24f   : > { %2139 = vst.msk [vmem:[%s3829_s23 + $0x68] sm:$0xff] %vm2125_vm3, %v2106_v33 }
 0x250   : > { %2138 = vst.msk [vmem:[%s3829_s23 + $0x60] sm:$0xff] %vm2125_vm3, %v2105_v44 }
 0x254   : > { %v2487_v46 = vpop.f32.mrb[14].mxu1 }
 0x255   : > { %v2010_v14 = vadd.f32 %v2487_v46, %v3823_v1  ;;  %v2004_v7 = vpop.f32.mrb[15].mxu1 }
 0x256   : > { %v2005_v51 = vadd.f32 %v3823_v1, %v2004_v7 }
 0x257   : > { %v2108_v57 = vmax.f32 %v2010_v14, 0.0 }
 0x258   : > { %v2107_v17 = vmax.f32 %v2005_v51, 0.0 }
 0x259   : > { %2141 = vst.msk [vmem:[%s3829_s23 + $0x78] sm:$0xff] %vm2125_vm3, %v2108_v57 }
 0x25a   : > { %2140 = vst.msk [vmem:[%s3829_s23 + $0x70] sm:$0xff] %vm2125_vm3, %v2107_v17 }
 0x25e   : > { %v2490_v27 = vpop.f32.mrb[16].mxu1 }
 0x25f   : > { %v2020_v20 = vadd.f32 %v2490_v27, %v3823_v1  ;;  %v2014_v36 = vpop.f32.mrb[17].mxu1 }
 0x260   : > { %v2015_v18 = vadd.f32 %v3823_v1, %v2014_v36 }
 0x261   : > { %v2110_v48 = vmax.f32 %v2020_v20, 0.0 }
 0x262   : > { %v2109_v50 = vmax.f32 %v2015_v18, 0.0 }
 0x263   : > { %2143 = vst.msk [vmem:[%s3829_s23 + $0x88] sm:$0xff] %vm2125_vm3, %v2110_v48 }
 0x264   : > { %2142 = vst.msk [vmem:[%s3829_s23 + $0x80] sm:$0xff] %vm2125_vm3, %v2109_v50 }
 0x267   : > { %v2493_v39 = vpop.f32.mrb[18].mxu1 }
 0x268   : > { %v2030_v43 = vadd.f32 %v2493_v39, %v3823_v1  ;;  %v2024_v55 = vpop.f32.mrb[19].mxu1 }
 0x269   : > { %v2025_v32 = vadd.f32 %v3823_v1, %v2024_v55 }
 0x26a   : > { %v2112_v5 = vmax.f32 %v2030_v43, 0.0 }
 0x26b   : > { %v2111_v9 = vmax.f32 %v2025_v32, 0.0 }
 0x26c   : > { %2145 = vst.msk [vmem:[%s3829_s23 + $0x98] sm:$0xff] %vm2125_vm3, %v2112_v5 }
 0x26d   : > { %2144 = vst.msk [vmem:[%s3829_s23 + $0x90] sm:$0xff] %vm2125_vm3, %v2111_v9 }
 0x271   : > { %v2496_v21 = vpop.f32.mrb[20].mxu1 }
 0x272   : > { %v2040_v63 = vadd.f32 %v2496_v21, %v3823_v1  ;;  %v2034_v49 = vpop.f32.mrb[21].mxu1 }
 0x273   : > { %v2035_v37 = vadd.f32 %v3823_v1, %v2034_v49 }
 0x274   : > { %v2114_v40 = vmax.f32 %v2040_v63, 0.0 }
 0x275   : > { %v2113_v61 = vmax.f32 %v2035_v37, 0.0 }
 0x276   : > { %2147 = vst.msk [vmem:[%s3829_s23 + $0xa8] sm:$0xff] %vm2125_vm3, %v2114_v40 }
 0x277   : > { %2146 = vst.msk [vmem:[%s3829_s23 + $0xa0] sm:$0xff] %vm2125_vm3, %v2113_v61 }
 0x27a   : > { %v2499_v34 = vpop.f32.mrb[22].mxu1 }
 0x27b   : > { %v2050_v38 = vadd.f32 %v2499_v34, %v3823_v1  ;;  %v2044_v8 = vpop.f32.mrb[23].mxu1 }
 0x27c   : > { %v2045_v2 = vadd.f32 %v3823_v1, %v2044_v8 }
 0x27d   : > { %v2116_v16 = vmax.f32 %v2050_v38, 0.0 }
 0x27e   : > { %v2115_v52 = vmax.f32 %v2045_v2, 0.0 }
 0x27f   : > { %2149 = vst.msk [vmem:[%s3829_s23 + $0xb8] sm:$0xff] %vm2125_vm3, %v2116_v16 }
 0x280   : > { %2148 = vst.msk [vmem:[%s3829_s23 + $0xb0] sm:$0xff] %vm2125_vm3, %v2115_v52 }
 0x284   : > { %v2502_v35 = vpop.f32.mrb[24].mxu1 }
 0x285   : > { %v2060_v6 = vadd.f32 %v2502_v35, %v3823_v1  ;;  %v2054_v3 = vpop.f32.mrb[25].mxu1 }
 0x286   : > { %v2055_v31 = vadd.f32 %v3823_v1, %v2054_v3 }
 0x287   : > { %v2118_v47 = vmax.f32 %v2060_v6, 0.0 }
 0x288   : > { %v2117_v4 = vmax.f32 %v2055_v31, 0.0 }
 0x289   : > { %2151 = vst.msk [vmem:[%s3829_s23 + $0xc8] sm:$0xff] %vm2125_vm3, %v2118_v47 }
 0x28a   : > { %2150 = vst.msk [vmem:[%s3829_s23 + $0xc0] sm:$0xff] %vm2125_vm3, %v2117_v4 }
 0x28d   : > { %v2505_v60 = vpop.f32.mrb[26].mxu1 }
 0x28e   : > { %v2070_v30 = vadd.f32 %v2505_v60, %v3823_v1  ;;  %v2064_v22 = vpop.f32.mrb[27].mxu1 }
 0x28f   : > { %v2065_v26 = vadd.f32 %v3823_v1, %v2064_v22 }
 0x290   : > { %v2120_v24 = vmax.f32 %v2070_v30, 0.0 }
 0x291   : > { %v2119_v11 = vmax.f32 %v2065_v26, 0.0 }
 0x292   : > { %2153 = vst.msk [vmem:[%s3829_s23 + $0xd8] sm:$0xff] %vm2125_vm3, %v2120_v24 }
 0x293   : > { %2152 = vst.msk [vmem:[%s3829_s23 + $0xd0] sm:$0xff] %vm2125_vm3, %v2119_v11 }
 0x297   : > { %v2508_v25 = vpop.f32.mrb[28].mxu1 }
 0x298   : > { %v2080_v28 = vadd.f32 %v2508_v25, %v3823_v1  ;;  %v2074_v59 = vpop.f32.mrb[29].mxu1 }
 0x299   : > { %v2075_v15 = vadd.f32 %v3823_v1, %v2074_v59 }
 0x29a   : > { %v2122_v10 = vmax.f32 %v2080_v28, 0.0 }
 0x29b   : > { %v2121_v58 = vmax.f32 %v2075_v15, 0.0 }
 0x29c   : > { %2155 = vst.msk [vmem:[%s3829_s23 + $0xe8] sm:$0xff] %vm2125_vm3, %v2122_v10 }
 0x29d   : > { %2154 = vst.msk [vmem:[%s3829_s23 + $0xe0] sm:$0xff] %vm2125_vm3, %v2121_v58 }
 0x2a0   : > { %v2511_v56 = vpop.f32.mrb[30].mxu1 }
 0x2a1   : > { %v2090_v19 = vadd.f32 %v2511_v56, %v3823_v1  ;;  %v2084_v29 = vpop.f32.mrb[31].mxu1 }
 0x2a2   : > { %v2085_v13 = vadd.f32 %v3823_v1, %v2084_v29 }
 0x2a3   : > { %v2124_v42 = vmax.f32 %v2090_v19, 0.0 }
 0x2a4   : > { %v2123_v54 = vmax.f32 %v2085_v13, 0.0 }
 0x2a5   : > { %2157 = vst.msk [vmem:[%s3829_s23 + $0xf8] sm:$0xff] %vm2125_vm3, %v2124_v42 }
 0x2a6   : > { %2156 = vst.msk [vmem:[%s3829_s23 + $0xf0] sm:$0xff] %vm2125_vm3, %v2123_v54 }
 0x2a7   : > { %2620 = shalt.err (!%p2617_p2)
}
 0x2a8   : > { %s2621_s15 = scalar_lea.hbm %s3926_s21, 4096  ;;  %s2625_s23 = scalar_lea.hbm %s3983_s7, 8192 }
 0x2a9   : > { %p2622_p4 = scmp.ne.s32.totalorder %s3926_s21, %s2621_s15  ;;  %p2626_p9 = scmp.lt.u32.totalorder %s3926_s21, %s3983_s7 }
 0x2aa   : > { %p2627_p1 = scmp.lt.u32.totalorder %s2625_s23, %s2621_s15  ;;  %p2629_p6 = scmp.lt.u32.totalorder %s2621_s15, %s3926_s21 }
 0x2ab   : > { %p2623_p5 = pnand %p2622_p4, %p3990_p11 }
 0x2ac   : > { %p2628_p3 = por %p2627_p1, %p2626_p9 }
 0x2ad   : > { %p2624_p7 = pneg %p2623_p5 }
 0x2ae   : > { %p2630_p12 = por %p2629_p6, %p2628_p3 }
 0x2b0   : > { %p2631_p13 = pnand %p2630_p12, %p2624_p7 }
 0x2b2   : > { %2634 = shalt.err (!%p2631_p13)
}
 0x2b3   : > { %s2680_s19 = smov 128   ;;  %s2681_s9 = smov 8  }
 0x2b4   : > { %2518 = dma.vmem_to_hbm [thread:$0]  (%p3990_p11), %s3928_s29, 4096, %s3926_s21, %s2159_s28, %s2680_s19, %s2680_s19, %s2681_s9  }
 0x2b5 PF: > { %s2187_s8 = sand.u32 1, %s2661_s24   ;;  %p3991_p8 = scmp.ne.s32.totalorder %s3988_s14, 0 }
 0x2b6   : > { %p3992_p10 = scmp.ge.s32.totalorder %s2673_s27, 2  ;;  %s2188_s11 = scalar_lea.sflag [#allocation5], %s2187_s8 }
 0x2b8   : > { %p2525_p0 = pnand %p3992_p10, %p3991_p8 }
 0x2ba   : > { %2656 = dma.done.wait (!%p2525_p0), %s2188_s11, 4096  }
 0x2bb   : > { %2658 = vsyncadd (!%p2525_p0), %s2188_s11, 4294963200  ;;  %p20_p2 = scmp.ge.s32.totalorder %s2747_s30, 4   ;;  %s3993_s24 = smov %s2665_s25 }
 0x2bc   : > { %s3994_s25 = smov %s2669_s26  ;;  %s3995_s26 = smov %s2759_s10 }
 0x2bd   : > { %s3996_s27 = smov %s2747_s30  ;;  %22 = sbr.rel (!%p20_p2) target bundleno = 5 (0x5), region = 97 }
 0x2c4   :  { %2193 = vsyncpa [#allocation4], 1 }
 0x2c5   :  { %2195 = vsyncpa [#allocation4 + $0x1], 1 }
 0x2c6   :  { %2196 = vsyncpa [#allocation5], 1 }
 0x2c7   :  { %2198 = vsyncpa [#allocation5 + $0x1], 1 }

</bundles_post_ra>
